<compile_context>
chip_gen: v7x
topology: tpu7x:2x2x1
jax: 0.10.0
libtpu: 0.0.40
codegen_flags: <defaults>
</compile_context>

<pallas_src>
import math
import numpy as np
import jax
import jax.numpy as jnp
from jax import lax
from jax.experimental import pallas as pl
from jax.experimental.pallas import tpu as pltpu


_SQRT_2_OVER_PI = math.sqrt(2.0 / math.pi)


def _gelu_tanh(x):
    # tanh-approx GELU: routes the transcendental to the EUP slot (idle in this kernel)
    # instead of a long erf polynomial on the VPU.
    return 0.5 * x * (1.0 + jnp.tanh(_SQRT_2_OVER_PI * (x + 0.044715 * (x * x * x))))


def _make_kernel(N, H, W, C_in, C_mid, K):
    assert K == 3, "module uses padding=1; K=3 is the spatial-dim-preserving configuration"
    HW = H * W

    def kernel(x_ref, w1_ref, dw_ref, w2_ref, mask_ref, o_ref):
        # x_ref   : (N*C_in, HW)       input, lane-dense (HW = 256 on lanes)
        # w1_ref  : (C_mid, C_in)      pw1 weight with BN1 scale folded in
        # dw_ref  : (N*C_mid, K*K+2)   BN2-scaled depthwise taps (batch-tiled) | c1 | c2
        # w2_ref  : (C_in, C_mid+1)    pw2 weight with BN3 scale folded in | c3
        # mask_ref: (4, HW)            [row!=0, row!=H-1, col!=0, col!=W-1] as f32
        # o_ref   : (N, C_in, HW)

        # ---- pointwise conv 1 (1x1) as unrolled VPU broadcast-FMAs, per batch ----
        h1_parts = []
        for n in range(N):
            acc = w1_ref[:, 0:1] * x_ref[n * C_in:n * C_in + 1, :]
            for c in range(1, C_in):
                acc = acc + w1_ref[:, c:c + 1] * x_ref[n * C_in + c:n * C_in + c + 1, :]
            h1_parts.append(acc)                                   # (C_mid, HW)
        h1 = jnp.concatenate(h1_parts, axis=0) if N > 1 else h1_parts[0]   # (N*C_mid, HW)

        # BN1 shift (scale already folded into w1) + GELU
        c1 = dw_ref[:, K * K:K * K + 1]
        h1 = _gelu_tanh(h1 + c1)

        # ---- depthwise 3x3 conv (padding=1): XLU rolls + precomputed boundary masks ----
        # Row padding is handled at the source: for a vertical shift the only values that
        # wrap around the flat HW axis come from the first (dh=+1) / last (dh=-1) row, and
        # no valid output position reads that row, so zeroing it once is exact.
        src = {
            0: h1,
            1: h1 * mask_ref[0:1, :],     # dh=+1: zero first row of the source
            -1: h1 * mask_ref[1:2, :],    # dh=-1: zero last row of the source
        }
        acc = None
        for dw in (-1, 0, 1):
            part = None                    # sum over kh for this dw (col mask applied once)
            for dh in (-1, 0, 1):
                s = dh * W + dw            # flat shift: tap reads pixel (r+dh, c+dw)
                t = src[dh] if s == 0 else pltpu.roll(src[dh], shift=(-s) % HW, axis=1)
                k = (dh + 1) * K + (dw + 1)
                term = dw_ref[:, k:k + 1] * t
                part = term if part is None else part + term
            if dw == -1:
                part = part * mask_ref[2:3, :]      # output col must have c-1 >= 0
            elif dw == 1:
                part = part * mask_ref[3:4, :]      # output col must have c+1 <= W-1
            acc = part if acc is None else acc + part

        # BN2 shift + GELU
        c2 = dw_ref[:, K * K + 1:K * K + 2]
        h2 = _gelu_tanh(acc + c2)

        # ---- pointwise conv 2 (1x1) + BN3 (scale folded, shift = c3), per batch ----
        c3 = w2_ref[:, C_mid:C_mid + 1]
        for n in range(N):
            out = w2_ref[:, 0:1] * h2[n * C_mid:n * C_mid + 1, :]
            for d in range(1, C_mid):
                out = out + w2_ref[:, d:d + 1] * h2[n * C_mid + d:n * C_mid + d + 1, :]
            o_ref[n] = out + c3

    return kernel


def depthwise_separable_pallas(x_nchw, params, K=3):
    """x_nchw: (N, C_in, H, W) float32 (PyTorch layout). Returns the same layout."""
    N, C_in, H, W = x_nchw.shape
    C_mid = params["w1"].shape[0]
    HW = H * W
    eps = 1e-5

    # Fold BN (inference mode) into a per-channel scale s (goes into the weights) and
    # shift t (stays as a tiny column).
    def fold(gamma, beta, mean, var, conv_bias):
        s = gamma / jnp.sqrt(var + eps)
        t = s * (conv_bias - mean) + beta
        return s, t

    s1, c1 = fold(params["g1"], params["be1"], params["m1"], params["v1"], params["b1"])
    s2, c2 = fold(params["g2"], params["be2"], params["m2"], params["v2"], params["bdw"])
    s3, c3 = fold(params["g3"], params["be3"], params["m3"], params["v3"], params["b2"])

    # BN scales folded into the weights; pack everything 2-D lane-dense.
    w1s = params["w1"] * s1[:, None]                                        # (C_mid, C_in)
    wdws = (params["wdw"] * s2[:, None, None]).reshape(C_mid, K * K)        # (C_mid, K*K)
    w2s = params["w2"] * s3[:, None]                                        # (C_in, C_mid)

    dwpack_1 = jnp.concatenate([wdws, c1[:, None], c2[:, None]], axis=1)    # (C_mid, K*K+2)
    dwpack = jnp.tile(dwpack_1, (N, 1))                                     # (N*C_mid, K*K+2)
    w2pack = jnp.concatenate([w2s, c3[:, None]], axis=1)                    # (C_in, C_mid+1)

    # Host-precomputed boundary masks for the rolled depthwise taps (f32 multiplies).
    idx = np.arange(HW)
    row, col = idx // W, idx % W
    masks = jnp.asarray(np.stack([
        (row != 0).astype(np.float32),        # source mask for dh=+1
        (row != H - 1).astype(np.float32),    # source mask for dh=-1
        (col != 0).astype(np.float32),        # result mask for dw=-1
        (col != W - 1).astype(np.float32),    # result mask for dw=+1
    ], axis=0))                                                             # (4, HW)

    x_flat = x_nchw.reshape(N * C_in, HW).astype(jnp.float32)

    kernel = _make_kernel(N, H, W, C_in, C_mid, K)
    vmem = lambda: pl.BlockSpec(memory_space=pltpu.MemorySpace.VMEM)

    out = pl.pallas_call(
        kernel,
        out_shape=jax.ShapeDtypeStruct((N, C_in, HW), jnp.float32),
        in_specs=[vmem(), vmem(), vmem(), vmem(), vmem()],
        out_specs=vmem(),
    )(x_flat, w1s, dwpack, w2pack, masks)

    return out.reshape(N, C_in, H, W)


def reference_jax(x_nchw, params, K=3, approximate_gelu=False):
    """Pure-JAX reference in NCHW (inference-mode BN), independent of the kernel path."""
    eps = 1e-5

    def bn(h, g, b, m, v):
        return ((h - m[None, :, None, None]) / jnp.sqrt(v[None, :, None, None] + eps)
                * g[None, :, None, None] + b[None, :, None, None])

    gelu = lambda t: jax.nn.gelu(t, approximate=approximate_gelu)

    h = jnp.einsum("nchw,dc->ndhw", x_nchw, params["w1"]) + params["b1"][None, :, None, None]
    h = gelu(bn(h, params["g1"], params["be1"], params["m1"], params["v1"]))

    C_mid = h.shape[1]
    rhs = jnp.transpose(params["wdw"], (1, 2, 0))[:, :, None, :]   # (K, K, 1, C_mid), HWIO
    h = lax.conv_general_dilated(
        h, rhs, window_strides=(1, 1), padding=((1, 1), (1, 1)),
        dimension_numbers=("NCHW", "HWIO", "NCHW"),
        feature_group_count=C_mid,
    ) + params["bdw"][None, :, None, None]
    h = gelu(bn(h, params["g2"], params["be2"], params["m2"], params["v2"]))

    h = jnp.einsum("nchw,dc->ndhw", h, params["w2"]) + params["b2"][None, :, None, None]
    h = bn(h, params["g3"], params["be3"], params["m3"], params["v3"])
    return h


def init_params(key, C_in, K=3, expansion_hardcoded=4):
    # PyTorch-convention weight shapes: pw1 (C_mid,C_in), dw (C_mid,K,K), pw2 (C_in,C_mid).
    C_mid = C_in * expansion_hardcoded  # module uses in_dim * 4 regardless of `expansion`
    ks = jax.random.split(key, 16)
    f32 = jnp.float32
    p = {
        "w1": 0.1 * jax.random.normal(ks[0], (C_mid, C_in), f32),
        "b1": 0.05 * jax.random.normal(ks[1], (C_mid,), f32),
        "g1": 1.0 + 0.1 * jax.random.normal(ks[2], (C_mid,), f32),
        "be1": 0.05 * jax.random.normal(ks[3], (C_mid,), f32),
        "m1": 0.1 * jax.random.normal(ks[4], (C_mid,), f32),
        "v1": jax.random.uniform(ks[5], (C_mid,), f32, 0.5, 1.5),
        "wdw": 0.1 * jax.random.normal(ks[6], (C_mid, K, K), f32),
        "bdw": 0.05 * jax.random.normal(ks[7], (C_mid,), f32),
        "g2": 1.0 + 0.1 * jax.random.normal(ks[8], (C_mid,), f32),
        "be2": 0.05 * jax.random.normal(ks[9], (C_mid,), f32),
        "m2": 0.1 * jax.random.normal(ks[10], (C_mid,), f32),
        "v2": jax.random.uniform(ks[11], (C_mid,), f32, 0.5, 1.5),
        "w2": 0.1 * jax.random.normal(ks[12], (C_in, C_mid), f32),
        "b2": 0.05 * jax.random.normal(ks[13], (C_in,), f32),
        "g3": 1.0 + 0.1 * jax.random.normal(ks[14], (C_in,), f32),
        "be3": 0.05 * jax.random.normal(ks[15], (C_in,), f32),
        "m3": 0.1 * jax.random.normal(jax.random.fold_in(key, 100), (C_in,), f32),
        "v3": jax.random.uniform(jax.random.fold_in(key, 101), (C_in,), f32, 0.5, 1.5),
    }
    return p


if __name__ == "__main__":
    key = jax.random.PRNGKey(0)
    N, C_in, H, W = 2, 4, 16, 16
    K = 3

    kx, kp = jax.random.split(key)
    x_nchw = jax.random.normal(kx, (N, C_in, H, W), jnp.float32)  # PyTorch NCHW input
    params = init_params(kp, C_in, K)

    out_nchw = depthwise_separable_pallas(x_nchw, params, K)
    jax.block_until_ready(out_nchw)

    # Tight check against a tanh-GELU reference (the exact math the kernel implements).
    ref_tanh = reference_jax(x_nchw, params, K, approximate_gelu=True)
    np.testing.assert_allclose(np.asarray(out_nchw), np.asarray(ref_tanh),
                               rtol=1e-4, atol=1e-4)

    # Looser check against the exact-erf GELU of the original torch module (semantics drift
    # from the EUP-friendly tanh approximation is <~1e-3 at these magnitudes).
    ref_erf = reference_jax(x_nchw, params, K, approximate_gelu=False)
    np.testing.assert_allclose(np.asarray(out_nchw), np.asarray(ref_erf),
                               rtol=2e-3, atol=2e-3)

    assert out_nchw.shape == (N, C_in, H, W)
    print("KERNEL_OK")
</pallas_src>

<mosaic_0001>
module attributes {stable_mosaic.version = 11 : i64} {
  func.func @kernel(%arg0: memref<8x256xf32, #tpu.memory_space<vmem>>, %arg1: memref<16x4xf32, #tpu.memory_space<vmem>>, %arg2: memref<32x11xf32, #tpu.memory_space<vmem>>, %arg3: memref<4x17xf32, #tpu.memory_space<vmem>>, %arg4: memref<4x256xf32, #tpu.memory_space<vmem>>, %arg5: memref<2x4x256xf32, #tpu.memory_space<vmem>>) attributes {dimension_semantics = [], scalar_prefetch = 0 : i64, scratch_operands = 0 : i64, tpu.core_type = #tpu.core_type<tc>} {
    %c0 = arith.constant 0 : index
    %c0_0 = arith.constant 0 : index
    %0 = vector.load %arg1[%c0, %c0_0] : memref<16x4xf32, #tpu.memory_space<vmem>>, vector<16x1xf32>
    %c0_1 = arith.constant 0 : index
    %c0_2 = arith.constant 0 : index
    %1 = vector.load %arg0[%c0_1, %c0_2] : memref<8x256xf32, #tpu.memory_space<vmem>>, vector<1x256xf32>
    %2 = vector.broadcast %0 : vector<16x1xf32> to vector<16x256xf32>
    %3 = vector.broadcast %1 : vector<1x256xf32> to vector<16x256xf32>
    %4 = arith.mulf %2, %3 : vector<16x256xf32>
    %c0_3 = arith.constant 0 : index
    %c1 = arith.constant 1 : index
    %5 = vector.load %arg1[%c0_3, %c1] : memref<16x4xf32, #tpu.memory_space<vmem>>, vector<16x1xf32>
    %c1_4 = arith.constant 1 : index
    %c0_5 = arith.constant 0 : index
    %6 = vector.load %arg0[%c1_4, %c0_5] : memref<8x256xf32, #tpu.memory_space<vmem>>, vector<1x256xf32>
    %7 = vector.broadcast %5 : vector<16x1xf32> to vector<16x256xf32>
    %8 = vector.broadcast %6 : vector<1x256xf32> to vector<16x256xf32>
    %9 = arith.mulf %7, %8 : vector<16x256xf32>
    %10 = arith.addf %4, %9 : vector<16x256xf32>
    %c0_6 = arith.constant 0 : index
    %c2 = arith.constant 2 : index
    %11 = vector.load %arg1[%c0_6, %c2] : memref<16x4xf32, #tpu.memory_space<vmem>>, vector<16x1xf32>
    %c2_7 = arith.constant 2 : index
    %c0_8 = arith.constant 0 : index
    %12 = vector.load %arg0[%c2_7, %c0_8] : memref<8x256xf32, #tpu.memory_space<vmem>>, vector<1x256xf32>
    %13 = vector.broadcast %11 : vector<16x1xf32> to vector<16x256xf32>
    %14 = vector.broadcast %12 : vector<1x256xf32> to vector<16x256xf32>
    %15 = arith.mulf %13, %14 : vector<16x256xf32>
    %16 = arith.addf %10, %15 : vector<16x256xf32>
    %c0_9 = arith.constant 0 : index
    %c3 = arith.constant 3 : index
    %17 = vector.load %arg1[%c0_9, %c3] : memref<16x4xf32, #tpu.memory_space<vmem>>, vector<16x1xf32>
    %c3_10 = arith.constant 3 : index
    %c0_11 = arith.constant 0 : index
    %18 = vector.load %arg0[%c3_10, %c0_11] : memref<8x256xf32, #tpu.memory_space<vmem>>, vector<1x256xf32>
    %19 = vector.broadcast %17 : vector<16x1xf32> to vector<16x256xf32>
    %20 = vector.broadcast %18 : vector<1x256xf32> to vector<16x256xf32>
    %21 = arith.mulf %19, %20 : vector<16x256xf32>
    %22 = arith.addf %16, %21 : vector<16x256xf32>
    %c0_12 = arith.constant 0 : index
    %c0_13 = arith.constant 0 : index
    %23 = vector.load %arg1[%c0_12, %c0_13] : memref<16x4xf32, #tpu.memory_space<vmem>>, vector<16x1xf32>
    %c4 = arith.constant 4 : index
    %c0_14 = arith.constant 0 : index
    %24 = vector.load %arg0[%c4, %c0_14] : memref<8x256xf32, #tpu.memory_space<vmem>>, vector<1x256xf32>
    %25 = vector.broadcast %23 : vector<16x1xf32> to vector<16x256xf32>
    %26 = vector.broadcast %24 : vector<1x256xf32> to vector<16x256xf32>
    %27 = arith.mulf %25, %26 : vector<16x256xf32>
    %c0_15 = arith.constant 0 : index
    %c1_16 = arith.constant 1 : index
    %28 = vector.load %arg1[%c0_15, %c1_16] : memref<16x4xf32, #tpu.memory_space<vmem>>, vector<16x1xf32>
    %c5 = arith.constant 5 : index
    %c0_17 = arith.constant 0 : index
    %29 = vector.load %arg0[%c5, %c0_17] : memref<8x256xf32, #tpu.memory_space<vmem>>, vector<1x256xf32>
    %30 = vector.broadcast %28 : vector<16x1xf32> to vector<16x256xf32>
    %31 = vector.broadcast %29 : vector<1x256xf32> to vector<16x256xf32>
    %32 = arith.mulf %30, %31 : vector<16x256xf32>
    %33 = arith.addf %27, %32 : vector<16x256xf32>
    %c0_18 = arith.constant 0 : index
    %c2_19 = arith.constant 2 : index
    %34 = vector.load %arg1[%c0_18, %c2_19] : memref<16x4xf32, #tpu.memory_space<vmem>>, vector<16x1xf32>
    %c6 = arith.constant 6 : index
    %c0_20 = arith.constant 0 : index
    %35 = vector.load %arg0[%c6, %c0_20] : memref<8x256xf32, #tpu.memory_space<vmem>>, vector<1x256xf32>
    %36 = vector.broadcast %34 : vector<16x1xf32> to vector<16x256xf32>
    %37 = vector.broadcast %35 : vector<1x256xf32> to vector<16x256xf32>
    %38 = arith.mulf %36, %37 : vector<16x256xf32>
    %39 = arith.addf %33, %38 : vector<16x256xf32>
    %c0_21 = arith.constant 0 : index
    %c3_22 = arith.constant 3 : index
    %40 = vector.load %arg1[%c0_21, %c3_22] : memref<16x4xf32, #tpu.memory_space<vmem>>, vector<16x1xf32>
    %c7 = arith.constant 7 : index
    %c0_23 = arith.constant 0 : index
    %41 = vector.load %arg0[%c7, %c0_23] : memref<8x256xf32, #tpu.memory_space<vmem>>, vector<1x256xf32>
    %42 = vector.broadcast %40 : vector<16x1xf32> to vector<16x256xf32>
    %43 = vector.broadcast %41 : vector<1x256xf32> to vector<16x256xf32>
    %44 = arith.mulf %42, %43 : vector<16x256xf32>
    %45 = arith.addf %39, %44 : vector<16x256xf32>
    %46 = tpu.concatenate %22, %45 in 0 : vector<16x256xf32>, vector<16x256xf32> -> vector<32x256xf32>
    %c0_24 = arith.constant 0 : index
    %c9 = arith.constant 9 : index
    %47 = vector.load %arg2[%c0_24, %c9] : memref<32x11xf32, #tpu.memory_space<vmem>>, vector<32x1xf32>
    %48 = vector.broadcast %47 : vector<32x1xf32> to vector<32x256xf32>
    %49 = arith.addf %46, %48 : vector<32x256xf32>
    %cst = arith.constant 5.000000e-01 : f32
    %50 = vector.broadcast %cst : f32 to vector<32x256xf32>
    %51 = arith.mulf %50, %49 : vector<32x256xf32>
    %52 = arith.mulf %49, %49 : vector<32x256xf32>
    %53 = arith.mulf %52, %49 : vector<32x256xf32>
    %cst_25 = arith.constant 4.471500e-02 : f32
    %54 = vector.broadcast %cst_25 : f32 to vector<32x256xf32>
    %55 = arith.mulf %54, %53 : vector<32x256xf32>
    %56 = arith.addf %49, %55 : vector<32x256xf32>
    %cst_26 = arith.constant 0.797884583 : f32
    %57 = vector.broadcast %cst_26 : f32 to vector<32x256xf32>
    %58 = arith.mulf %57, %56 : vector<32x256xf32>
    %59 = math.tanh %58 : vector<32x256xf32>
    %cst_27 = arith.constant 1.000000e+00 : f32
    %60 = vector.broadcast %cst_27 : f32 to vector<32x256xf32>
    %61 = arith.addf %60, %59 : vector<32x256xf32>
    %62 = arith.mulf %51, %61 : vector<32x256xf32>
    %c0_28 = arith.constant 0 : index
    %c0_29 = arith.constant 0 : index
    %63 = vector.load %arg4[%c0_28, %c0_29] : memref<4x256xf32, #tpu.memory_space<vmem>>, vector<1x256xf32>
    %64 = vector.broadcast %63 : vector<1x256xf32> to vector<32x256xf32>
    %65 = arith.mulf %62, %64 : vector<32x256xf32>
    %c1_30 = arith.constant 1 : index
    %c0_31 = arith.constant 0 : index
    %66 = vector.load %arg4[%c1_30, %c0_31] : memref<4x256xf32, #tpu.memory_space<vmem>>, vector<1x256xf32>
    %67 = vector.broadcast %66 : vector<1x256xf32> to vector<32x256xf32>
    %68 = arith.mulf %62, %67 : vector<32x256xf32>
    %c17_i32 = arith.constant 17 : i32
    %69 = tpu.dynamic_rotate %68 by %c17_i32 dim 1 : vector<32x256xf32>, i32 -> vector<32x256xf32>
    %c0_32 = arith.constant 0 : index
    %c0_33 = arith.constant 0 : index
    %70 = vector.load %arg2[%c0_32, %c0_33] : memref<32x11xf32, #tpu.memory_space<vmem>>, vector<32x1xf32>
    %71 = vector.broadcast %70 : vector<32x1xf32> to vector<32x256xf32>
    %72 = arith.mulf %71, %69 : vector<32x256xf32>
    %c1_i32 = arith.constant 1 : i32
    %73 = tpu.dynamic_rotate %62 by %c1_i32 dim 1 : vector<32x256xf32>, i32 -> vector<32x256xf32>
    %c0_34 = arith.constant 0 : index
    %c3_35 = arith.constant 3 : index
    %74 = vector.load %arg2[%c0_34, %c3_35] : memref<32x11xf32, #tpu.memory_space<vmem>>, vector<32x1xf32>
    %75 = vector.broadcast %74 : vector<32x1xf32> to vector<32x256xf32>
    %76 = arith.mulf %75, %73 : vector<32x256xf32>
    %77 = arith.addf %72, %76 : vector<32x256xf32>
    %c241_i32 = arith.constant 241 : i32
    %78 = tpu.dynamic_rotate %65 by %c241_i32 dim 1 : vector<32x256xf32>, i32 -> vector<32x256xf32>
    %c0_36 = arith.constant 0 : index
    %c6_37 = arith.constant 6 : index
    %79 = vector.load %arg2[%c0_36, %c6_37] : memref<32x11xf32, #tpu.memory_space<vmem>>, vector<32x1xf32>
    %80 = vector.broadcast %79 : vector<32x1xf32> to vector<32x256xf32>
    %81 = arith.mulf %80, %78 : vector<32x256xf32>
    %82 = arith.addf %77, %81 : vector<32x256xf32>
    %c2_38 = arith.constant 2 : index
    %c0_39 = arith.constant 0 : index
    %83 = vector.load %arg4[%c2_38, %c0_39] : memref<4x256xf32, #tpu.memory_space<vmem>>, vector<1x256xf32>
    %84 = vector.broadcast %83 : vector<1x256xf32> to vector<32x256xf32>
    %85 = arith.mulf %82, %84 : vector<32x256xf32>
    %c16_i32 = arith.constant 16 : i32
    %86 = tpu.dynamic_rotate %68 by %c16_i32 dim 1 : vector<32x256xf32>, i32 -> vector<32x256xf32>
    %c0_40 = arith.constant 0 : index
    %c1_41 = arith.constant 1 : index
    %87 = vector.load %arg2[%c0_40, %c1_41] : memref<32x11xf32, #tpu.memory_space<vmem>>, vector<32x1xf32>
    %88 = vector.broadcast %87 : vector<32x1xf32> to vector<32x256xf32>
    %89 = arith.mulf %88, %86 : vector<32x256xf32>
    %c0_42 = arith.constant 0 : index
    %c4_43 = arith.constant 4 : index
    %90 = vector.load %arg2[%c0_42, %c4_43] : memref<32x11xf32, #tpu.memory_space<vmem>>, vector<32x1xf32>
    %91 = vector.broadcast %90 : vector<32x1xf32> to vector<32x256xf32>
    %92 = arith.mulf %91, %62 : vector<32x256xf32>
    %93 = arith.addf %89, %92 : vector<32x256xf32>
    %c240_i32 = arith.constant 240 : i32
    %94 = tpu.dynamic_rotate %65 by %c240_i32 dim 1 : vector<32x256xf32>, i32 -> vector<32x256xf32>
    %c0_44 = arith.constant 0 : index
    %c7_45 = arith.constant 7 : index
    %95 = vector.load %arg2[%c0_44, %c7_45] : memref<32x11xf32, #tpu.memory_space<vmem>>, vector<32x1xf32>
    %96 = vector.broadcast %95 : vector<32x1xf32> to vector<32x256xf32>
    %97 = arith.mulf %96, %94 : vector<32x256xf32>
    %98 = arith.addf %93, %97 : vector<32x256xf32>
    %99 = arith.addf %85, %98 : vector<32x256xf32>
    %c15_i32 = arith.constant 15 : i32
    %100 = tpu.dynamic_rotate %68 by %c15_i32 dim 1 : vector<32x256xf32>, i32 -> vector<32x256xf32>
    %c0_46 = arith.constant 0 : index
    %c2_47 = arith.constant 2 : index
    %101 = vector.load %arg2[%c0_46, %c2_47] : memref<32x11xf32, #tpu.memory_space<vmem>>, vector<32x1xf32>
    %102 = vector.broadcast %101 : vector<32x1xf32> to vector<32x256xf32>
    %103 = arith.mulf %102, %100 : vector<32x256xf32>
    %c255_i32 = arith.constant 255 : i32
    %104 = tpu.dynamic_rotate %62 by %c255_i32 dim 1 : vector<32x256xf32>, i32 -> vector<32x256xf32>
    %c0_48 = arith.constant 0 : index
    %c5_49 = arith.constant 5 : index
    %105 = vector.load %arg2[%c0_48, %c5_49] : memref<32x11xf32, #tpu.memory_space<vmem>>, vector<32x1xf32>
    %106 = vector.broadcast %105 : vector<32x1xf32> to vector<32x256xf32>
    %107 = arith.mulf %106, %104 : vector<32x256xf32>
    %108 = arith.addf %103, %107 : vector<32x256xf32>
    %c239_i32 = arith.constant 239 : i32
    %109 = tpu.dynamic_rotate %65 by %c239_i32 dim 1 : vector<32x256xf32>, i32 -> vector<32x256xf32>
    %c0_50 = arith.constant 0 : index
    %c8 = arith.constant 8 : index
    %110 = vector.load %arg2[%c0_50, %c8] : memref<32x11xf32, #tpu.memory_space<vmem>>, vector<32x1xf32>
    %111 = vector.broadcast %110 : vector<32x1xf32> to vector<32x256xf32>
    %112 = arith.mulf %111, %109 : vector<32x256xf32>
    %113 = arith.addf %108, %112 : vector<32x256xf32>
    %c3_51 = arith.constant 3 : index
    %c0_52 = arith.constant 0 : index
    %114 = vector.load %arg4[%c3_51, %c0_52] : memref<4x256xf32, #tpu.memory_space<vmem>>, vector<1x256xf32>
    %115 = vector.broadcast %114 : vector<1x256xf32> to vector<32x256xf32>
    %116 = arith.mulf %113, %115 : vector<32x256xf32>
    %117 = arith.addf %99, %116 : vector<32x256xf32>
    %c0_53 = arith.constant 0 : index
    %c10 = arith.constant 10 : index
    %118 = vector.load %arg2[%c0_53, %c10] : memref<32x11xf32, #tpu.memory_space<vmem>>, vector<32x1xf32>
    %119 = vector.broadcast %118 : vector<32x1xf32> to vector<32x256xf32>
    %120 = arith.addf %117, %119 : vector<32x256xf32>
    %cst_54 = arith.constant 5.000000e-01 : f32
    %121 = vector.broadcast %cst_54 : f32 to vector<32x256xf32>
    %122 = arith.mulf %121, %120 : vector<32x256xf32>
    %123 = arith.mulf %120, %120 : vector<32x256xf32>
    %124 = arith.mulf %123, %120 : vector<32x256xf32>
    %cst_55 = arith.constant 4.471500e-02 : f32
    %125 = vector.broadcast %cst_55 : f32 to vector<32x256xf32>
    %126 = arith.mulf %125, %124 : vector<32x256xf32>
    %127 = arith.addf %120, %126 : vector<32x256xf32>
    %cst_56 = arith.constant 0.797884583 : f32
    %128 = vector.broadcast %cst_56 : f32 to vector<32x256xf32>
    %129 = arith.mulf %128, %127 : vector<32x256xf32>
    %130 = math.tanh %129 : vector<32x256xf32>
    %cst_57 = arith.constant 1.000000e+00 : f32
    %131 = vector.broadcast %cst_57 : f32 to vector<32x256xf32>
    %132 = arith.addf %131, %130 : vector<32x256xf32>
    %133 = arith.mulf %122, %132 : vector<32x256xf32>
    %c0_58 = arith.constant 0 : index
    %c16 = arith.constant 16 : index
    %134 = vector.load %arg3[%c0_58, %c16] : memref<4x17xf32, #tpu.memory_space<vmem>>, vector<4x1xf32>
    %c0_59 = arith.constant 0 : index
    %c0_60 = arith.constant 0 : index
    %135 = vector.load %arg3[%c0_59, %c0_60] : memref<4x17xf32, #tpu.memory_space<vmem>>, vector<4x1xf32>
    %136 = vector.extract_strided_slice %133 {offsets = [0, 0], sizes = [1, 256], strides = [1, 1]} : vector<32x256xf32> to vector<1x256xf32>
    %137 = vector.broadcast %135 : vector<4x1xf32> to vector<4x256xf32>
    %138 = vector.broadcast %136 : vector<1x256xf32> to vector<4x256xf32>
    %139 = arith.mulf %137, %138 : vector<4x256xf32>
    %c0_61 = arith.constant 0 : index
    %c1_62 = arith.constant 1 : index
    %140 = vector.load %arg3[%c0_61, %c1_62] : memref<4x17xf32, #tpu.memory_space<vmem>>, vector<4x1xf32>
    %141 = vector.extract_strided_slice %133 {offsets = [1, 0], sizes = [1, 256], strides = [1, 1]} : vector<32x256xf32> to vector<1x256xf32>
    %142 = vector.broadcast %140 : vector<4x1xf32> to vector<4x256xf32>
    %143 = vector.broadcast %141 : vector<1x256xf32> to vector<4x256xf32>
    %144 = arith.mulf %142, %143 : vector<4x256xf32>
    %145 = arith.addf %139, %144 : vector<4x256xf32>
    %c0_63 = arith.constant 0 : index
    %c2_64 = arith.constant 2 : index
    %146 = vector.load %arg3[%c0_63, %c2_64] : memref<4x17xf32, #tpu.memory_space<vmem>>, vector<4x1xf32>
    %147 = vector.extract_strided_slice %133 {offsets = [2, 0], sizes = [1, 256], strides = [1, 1]} : vector<32x256xf32> to vector<1x256xf32>
    %148 = vector.broadcast %146 : vector<4x1xf32> to vector<4x256xf32>
    %149 = vector.broadcast %147 : vector<1x256xf32> to vector<4x256xf32>
    %150 = arith.mulf %148, %149 : vector<4x256xf32>
    %151 = arith.addf %145, %150 : vector<4x256xf32>
    %c0_65 = arith.constant 0 : index
    %c3_66 = arith.constant 3 : index
    %152 = vector.load %arg3[%c0_65, %c3_66] : memref<4x17xf32, #tpu.memory_space<vmem>>, vector<4x1xf32>
    %153 = vector.extract_strided_slice %133 {offsets = [3, 0], sizes = [1, 256], strides = [1, 1]} : vector<32x256xf32> to vector<1x256xf32>
    %154 = vector.broadcast %152 : vector<4x1xf32> to vector<4x256xf32>
    %155 = vector.broadcast %153 : vector<1x256xf32> to vector<4x256xf32>
    %156 = arith.mulf %154, %155 : vector<4x256xf32>
    %157 = arith.addf %151, %156 : vector<4x256xf32>
    %c0_67 = arith.constant 0 : index
    %c4_68 = arith.constant 4 : index
    %158 = vector.load %arg3[%c0_67, %c4_68] : memref<4x17xf32, #tpu.memory_space<vmem>>, vector<4x1xf32>
    %159 = vector.extract_strided_slice %133 {offsets = [4, 0], sizes = [1, 256], strides = [1, 1]} : vector<32x256xf32> to vector<1x256xf32>
    %160 = vector.broadcast %158 : vector<4x1xf32> to vector<4x256xf32>
    %161 = vector.broadcast %159 : vector<1x256xf32> to vector<4x256xf32>
    %162 = arith.mulf %160, %161 : vector<4x256xf32>
    %163 = arith.addf %157, %162 : vector<4x256xf32>
    %c0_69 = arith.constant 0 : index
    %c5_70 = arith.constant 5 : index
    %164 = vector.load %arg3[%c0_69, %c5_70] : memref<4x17xf32, #tpu.memory_space<vmem>>, vector<4x1xf32>
    %165 = vector.extract_strided_slice %133 {offsets = [5, 0], sizes = [1, 256], strides = [1, 1]} : vector<32x256xf32> to vector<1x256xf32>
    %166 = vector.broadcast %164 : vector<4x1xf32> to vector<4x256xf32>
    %167 = vector.broadcast %165 : vector<1x256xf32> to vector<4x256xf32>
    %168 = arith.mulf %166, %167 : vector<4x256xf32>
    %169 = arith.addf %163, %168 : vector<4x256xf32>
    %c0_71 = arith.constant 0 : index
    %c6_72 = arith.constant 6 : index
    %170 = vector.load %arg3[%c0_71, %c6_72] : memref<4x17xf32, #tpu.memory_space<vmem>>, vector<4x1xf32>
    %171 = vector.extract_strided_slice %133 {offsets = [6, 0], sizes = [1, 256], strides = [1, 1]} : vector<32x256xf32> to vector<1x256xf32>
    %172 = vector.broadcast %170 : vector<4x1xf32> to vector<4x256xf32>
    %173 = vector.broadcast %171 : vector<1x256xf32> to vector<4x256xf32>
    %174 = arith.mulf %172, %173 : vector<4x256xf32>
    %175 = arith.addf %169, %174 : vector<4x256xf32>
    %c0_73 = arith.constant 0 : index
    %c7_74 = arith.constant 7 : index
    %176 = vector.load %arg3[%c0_73, %c7_74] : memref<4x17xf32, #tpu.memory_space<vmem>>, vector<4x1xf32>
    %177 = vector.extract_strided_slice %133 {offsets = [7, 0], sizes = [1, 256], strides = [1, 1]} : vector<32x256xf32> to vector<1x256xf32>
    %178 = vector.broadcast %176 : vector<4x1xf32> to vector<4x256xf32>
    %179 = vector.broadcast %177 : vector<1x256xf32> to vector<4x256xf32>
    %180 = arith.mulf %178, %179 : vector<4x256xf32>
    %181 = arith.addf %175, %180 : vector<4x256xf32>
    %c0_75 = arith.constant 0 : index
    %c8_76 = arith.constant 8 : index
    %182 = vector.load %arg3[%c0_75, %c8_76] : memref<4x17xf32, #tpu.memory_space<vmem>>, vector<4x1xf32>
    %183 = vector.extract_strided_slice %133 {offsets = [8, 0], sizes = [1, 256], strides = [1, 1]} : vector<32x256xf32> to vector<1x256xf32>
    %184 = vector.broadcast %182 : vector<4x1xf32> to vector<4x256xf32>
    %185 = vector.broadcast %183 : vector<1x256xf32> to vector<4x256xf32>
    %186 = arith.mulf %184, %185 : vector<4x256xf32>
    %187 = arith.addf %181, %186 : vector<4x256xf32>
    %c0_77 = arith.constant 0 : index
    %c9_78 = arith.constant 9 : index
    %188 = vector.load %arg3[%c0_77, %c9_78] : memref<4x17xf32, #tpu.memory_space<vmem>>, vector<4x1xf32>
    %189 = vector.extract_strided_slice %133 {offsets = [9, 0], sizes = [1, 256], strides = [1, 1]} : vector<32x256xf32> to vector<1x256xf32>
    %190 = vector.broadcast %188 : vector<4x1xf32> to vector<4x256xf32>
    %191 = vector.broadcast %189 : vector<1x256xf32> to vector<4x256xf32>
    %192 = arith.mulf %190, %191 : vector<4x256xf32>
    %193 = arith.addf %187, %192 : vector<4x256xf32>
    %c0_79 = arith.constant 0 : index
    %c10_80 = arith.constant 10 : index
    %194 = vector.load %arg3[%c0_79, %c10_80] : memref<4x17xf32, #tpu.memory_space<vmem>>, vector<4x1xf32>
    %195 = vector.extract_strided_slice %133 {offsets = [10, 0], sizes = [1, 256], strides = [1, 1]} : vector<32x256xf32> to vector<1x256xf32>
    %196 = vector.broadcast %194 : vector<4x1xf32> to vector<4x256xf32>
    %197 = vector.broadcast %195 : vector<1x256xf32> to vector<4x256xf32>
    %198 = arith.mulf %196, %197 : vector<4x256xf32>
    %199 = arith.addf %193, %198 : vector<4x256xf32>
    %c0_81 = arith.constant 0 : index
    %c11 = arith.constant 11 : index
    %200 = vector.load %arg3[%c0_81, %c11] : memref<4x17xf32, #tpu.memory_space<vmem>>, vector<4x1xf32>
    %201 = vector.extract_strided_slice %133 {offsets = [11, 0], sizes = [1, 256], strides = [1, 1]} : vector<32x256xf32> to vector<1x256xf32>
    %202 = vector.broadcast %200 : vector<4x1xf32> to vector<4x256xf32>
    %203 = vector.broadcast %201 : vector<1x256xf32> to vector<4x256xf32>
    %204 = arith.mulf %202, %203 : vector<4x256xf32>
    %205 = arith.addf %199, %204 : vector<4x256xf32>
    %c0_82 = arith.constant 0 : index
    %c12 = arith.constant 12 : index
    %206 = vector.load %arg3[%c0_82, %c12] : memref<4x17xf32, #tpu.memory_space<vmem>>, vector<4x1xf32>
    %207 = vector.extract_strided_slice %133 {offsets = [12, 0], sizes = [1, 256], strides = [1, 1]} : vector<32x256xf32> to vector<1x256xf32>
    %208 = vector.broadcast %206 : vector<4x1xf32> to vector<4x256xf32>
    %209 = vector.broadcast %207 : vector<1x256xf32> to vector<4x256xf32>
    %210 = arith.mulf %208, %209 : vector<4x256xf32>
    %211 = arith.addf %205, %210 : vector<4x256xf32>
    %c0_83 = arith.constant 0 : index
    %c13 = arith.constant 13 : index
    %212 = vector.load %arg3[%c0_83, %c13] : memref<4x17xf32, #tpu.memory_space<vmem>>, vector<4x1xf32>
    %213 = vector.extract_strided_slice %133 {offsets = [13, 0], sizes = [1, 256], strides = [1, 1]} : vector<32x256xf32> to vector<1x256xf32>
    %214 = vector.broadcast %212 : vector<4x1xf32> to vector<4x256xf32>
    %215 = vector.broadcast %213 : vector<1x256xf32> to vector<4x256xf32>
    %216 = arith.mulf %214, %215 : vector<4x256xf32>
    %217 = arith.addf %211, %216 : vector<4x256xf32>
    %c0_84 = arith.constant 0 : index
    %c14 = arith.constant 14 : index
    %218 = vector.load %arg3[%c0_84, %c14] : memref<4x17xf32, #tpu.memory_space<vmem>>, vector<4x1xf32>
    %219 = vector.extract_strided_slice %133 {offsets = [14, 0], sizes = [1, 256], strides = [1, 1]} : vector<32x256xf32> to vector<1x256xf32>
    %220 = vector.broadcast %218 : vector<4x1xf32> to vector<4x256xf32>
    %221 = vector.broadcast %219 : vector<1x256xf32> to vector<4x256xf32>
    %222 = arith.mulf %220, %221 : vector<4x256xf32>
    %223 = arith.addf %217, %222 : vector<4x256xf32>
    %c0_85 = arith.constant 0 : index
    %c15 = arith.constant 15 : index
    %224 = vector.load %arg3[%c0_85, %c15] : memref<4x17xf32, #tpu.memory_space<vmem>>, vector<4x1xf32>
    %225 = vector.extract_strided_slice %133 {offsets = [15, 0], sizes = [1, 256], strides = [1, 1]} : vector<32x256xf32> to vector<1x256xf32>
    %226 = vector.broadcast %224 : vector<4x1xf32> to vector<4x256xf32>
    %227 = vector.broadcast %225 : vector<1x256xf32> to vector<4x256xf32>
    %228 = arith.mulf %226, %227 : vector<4x256xf32>
    %229 = arith.addf %223, %228 : vector<4x256xf32>
    %230 = vector.broadcast %134 : vector<4x1xf32> to vector<4x256xf32>
    %231 = arith.addf %229, %230 : vector<4x256xf32>
    %c0_86 = arith.constant 0 : index
    %c0_87 = arith.constant 0 : index
    %c0_88 = arith.constant 0 : index
    %232 = vector.load %arg5[%c0_86, %c0_87, %c0_88] : memref<2x4x256xf32, #tpu.memory_space<vmem>>, vector<1x4x256xf32>
    %233 = vector.shape_cast %232 : vector<1x4x256xf32> to vector<4x256xf32>
    %234 = vector.shape_cast %231 : vector<4x256xf32> to vector<1x4x256xf32>
    tpu.vector_store %arg5[%c0_86, %c0_87, %c0_88], %234 {strides = array<i32>} : memref<2x4x256xf32, #tpu.memory_space<vmem>>, vector<1x4x256xf32>,
    %c0_89 = arith.constant 0 : index
    %c0_90 = arith.constant 0 : index
    %235 = vector.load %arg3[%c0_89, %c0_90] : memref<4x17xf32, #tpu.memory_space<vmem>>, vector<4x1xf32>
    %236 = vector.extract_strided_slice %133 {offsets = [16, 0], sizes = [1, 256], strides = [1, 1]} : vector<32x256xf32> to vector<1x256xf32>
    %237 = vector.broadcast %235 : vector<4x1xf32> to vector<4x256xf32>
    %238 = vector.broadcast %236 : vector<1x256xf32> to vector<4x256xf32>
    %239 = arith.mulf %237, %238 : vector<4x256xf32>
    %c0_91 = arith.constant 0 : index
    %c1_92 = arith.constant 1 : index
    %240 = vector.load %arg3[%c0_91, %c1_92] : memref<4x17xf32, #tpu.memory_space<vmem>>, vector<4x1xf32>
    %241 = vector.extract_strided_slice %133 {offsets = [17, 0], sizes = [1, 256], strides = [1, 1]} : vector<32x256xf32> to vector<1x256xf32>
    %242 = vector.broadcast %240 : vector<4x1xf32> to vector<4x256xf32>
    %243 = vector.broadcast %241 : vector<1x256xf32> to vector<4x256xf32>
    %244 = arith.mulf %242, %243 : vector<4x256xf32>
    %245 = arith.addf %239, %244 : vector<4x256xf32>
    %c0_93 = arith.constant 0 : index
    %c2_94 = arith.constant 2 : index
    %246 = vector.load %arg3[%c0_93, %c2_94] : memref<4x17xf32, #tpu.memory_space<vmem>>, vector<4x1xf32>
    %247 = vector.extract_strided_slice %133 {offsets = [18, 0], sizes = [1, 256], strides = [1, 1]} : vector<32x256xf32> to vector<1x256xf32>
    %248 = vector.broadcast %246 : vector<4x1xf32> to vector<4x256xf32>
    %249 = vector.broadcast %247 : vector<1x256xf32> to vector<4x256xf32>
    %250 = arith.mulf %248, %249 : vector<4x256xf32>
    %251 = arith.addf %245, %250 : vector<4x256xf32>
    %c0_95 = arith.constant 0 : index
    %c3_96 = arith.constant 3 : index
    %252 = vector.load %arg3[%c0_95, %c3_96] : memref<4x17xf32, #tpu.memory_space<vmem>>, vector<4x1xf32>
    %253 = vector.extract_strided_slice %133 {offsets = [19, 0], sizes = [1, 256], strides = [1, 1]} : vector<32x256xf32> to vector<1x256xf32>
    %254 = vector.broadcast %252 : vector<4x1xf32> to vector<4x256xf32>
    %255 = vector.broadcast %253 : vector<1x256xf32> to vector<4x256xf32>
    %256 = arith.mulf %254, %255 : vector<4x256xf32>
    %257 = arith.addf %251, %256 : vector<4x256xf32>
    %c0_97 = arith.constant 0 : index
    %c4_98 = arith.constant 4 : index
    %258 = vector.load %arg3[%c0_97, %c4_98] : memref<4x17xf32, #tpu.memory_space<vmem>>, vector<4x1xf32>
    %259 = vector.extract_strided_slice %133 {offsets = [20, 0], sizes = [1, 256], strides = [1, 1]} : vector<32x256xf32> to vector<1x256xf32>
    %260 = vector.broadcast %258 : vector<4x1xf32> to vector<4x256xf32>
    %261 = vector.broadcast %259 : vector<1x256xf32> to vector<4x256xf32>
    %262 = arith.mulf %260, %261 : vector<4x256xf32>
    %263 = arith.addf %257, %262 : vector<4x256xf32>
    %c0_99 = arith.constant 0 : index
    %c5_100 = arith.constant 5 : index
    %264 = vector.load %arg3[%c0_99, %c5_100] : memref<4x17xf32, #tpu.memory_space<vmem>>, vector<4x1xf32>
    %265 = vector.extract_strided_slice %133 {offsets = [21, 0], sizes = [1, 256], strides = [1, 1]} : vector<32x256xf32> to vector<1x256xf32>
    %266 = vector.broadcast %264 : vector<4x1xf32> to vector<4x256xf32>
    %267 = vector.broadcast %265 : vector<1x256xf32> to vector<4x256xf32>
    %268 = arith.mulf %266, %267 : vector<4x256xf32>
    %269 = arith.addf %263, %268 : vector<4x256xf32>
    %c0_101 = arith.constant 0 : index
    %c6_102 = arith.constant 6 : index
    %270 = vector.load %arg3[%c0_101, %c6_102] : memref<4x17xf32, #tpu.memory_space<vmem>>, vector<4x1xf32>
    %271 = vector.extract_strided_slice %133 {offsets = [22, 0], sizes = [1, 256], strides = [1, 1]} : vector<32x256xf32> to vector<1x256xf32>
    %272 = vector.broadcast %270 : vector<4x1xf32> to vector<4x256xf32>
    %273 = vector.broadcast %271 : vector<1x256xf32> to vector<4x256xf32>
    %274 = arith.mulf %272, %273 : vector<4x256xf32>
    %275 = arith.addf %269, %274 : vector<4x256xf32>
    %c0_103 = arith.constant 0 : index
    %c7_104 = arith.constant 7 : index
    %276 = vector.load %arg3[%c0_103, %c7_104] : memref<4x17xf32, #tpu.memory_space<vmem>>, vector<4x1xf32>
    %277 = vector.extract_strided_slice %133 {offsets = [23, 0], sizes = [1, 256], strides = [1, 1]} : vector<32x256xf32> to vector<1x256xf32>
    %278 = vector.broadcast %276 : vector<4x1xf32> to vector<4x256xf32>
    %279 = vector.broadcast %277 : vector<1x256xf32> to vector<4x256xf32>
    %280 = arith.mulf %278, %279 : vector<4x256xf32>
    %281 = arith.addf %275, %280 : vector<4x256xf32>
    %c0_105 = arith.constant 0 : index
    %c8_106 = arith.constant 8 : index
    %282 = vector.load %arg3[%c0_105, %c8_106] : memref<4x17xf32, #tpu.memory_space<vmem>>, vector<4x1xf32>
    %283 = vector.extract_strided_slice %133 {offsets = [24, 0], sizes = [1, 256], strides = [1, 1]} : vector<32x256xf32> to vector<1x256xf32>
    %284 = vector.broadcast %282 : vector<4x1xf32> to vector<4x256xf32>
    %285 = vector.broadcast %283 : vector<1x256xf32> to vector<4x256xf32>
    %286 = arith.mulf %284, %285 : vector<4x256xf32>
    %287 = arith.addf %281, %286 : vector<4x256xf32>
    %c0_107 = arith.constant 0 : index
    %c9_108 = arith.constant 9 : index
    %288 = vector.load %arg3[%c0_107, %c9_108] : memref<4x17xf32, #tpu.memory_space<vmem>>, vector<4x1xf32>
    %289 = vector.extract_strided_slice %133 {offsets = [25, 0], sizes = [1, 256], strides = [1, 1]} : vector<32x256xf32> to vector<1x256xf32>
    %290 = vector.broadcast %288 : vector<4x1xf32> to vector<4x256xf32>
    %291 = vector.broadcast %289 : vector<1x256xf32> to vector<4x256xf32>
    %292 = arith.mulf %290, %291 : vector<4x256xf32>
    %293 = arith.addf %287, %292 : vector<4x256xf32>
    %c0_109 = arith.constant 0 : index
    %c10_110 = arith.constant 10 : index
    %294 = vector.load %arg3[%c0_109, %c10_110] : memref<4x17xf32, #tpu.memory_space<vmem>>, vector<4x1xf32>
    %295 = vector.extract_strided_slice %133 {offsets = [26, 0], sizes = [1, 256], strides = [1, 1]} : vector<32x256xf32> to vector<1x256xf32>
    %296 = vector.broadcast %294 : vector<4x1xf32> to vector<4x256xf32>
    %297 = vector.broadcast %295 : vector<1x256xf32> to vector<4x256xf32>
    %298 = arith.mulf %296, %297 : vector<4x256xf32>
    %299 = arith.addf %293, %298 : vector<4x256xf32>
    %c0_111 = arith.constant 0 : index
    %c11_112 = arith.constant 11 : index
    %300 = vector.load %arg3[%c0_111, %c11_112] : memref<4x17xf32, #tpu.memory_space<vmem>>, vector<4x1xf32>
    %301 = vector.extract_strided_slice %133 {offsets = [27, 0], sizes = [1, 256], strides = [1, 1]} : vector<32x256xf32> to vector<1x256xf32>
    %302 = vector.broadcast %300 : vector<4x1xf32> to vector<4x256xf32>
    %303 = vector.broadcast %301 : vector<1x256xf32> to vector<4x256xf32>
    %304 = arith.mulf %302, %303 : vector<4x256xf32>
    %305 = arith.addf %299, %304 : vector<4x256xf32>
    %c0_113 = arith.constant 0 : index
    %c12_114 = arith.constant 12 : index
    %306 = vector.load %arg3[%c0_113, %c12_114] : memref<4x17xf32, #tpu.memory_space<vmem>>, vector<4x1xf32>
    %307 = vector.extract_strided_slice %133 {offsets = [28, 0], sizes = [1, 256], strides = [1, 1]} : vector<32x256xf32> to vector<1x256xf32>
    %308 = vector.broadcast %306 : vector<4x1xf32> to vector<4x256xf32>
    %309 = vector.broadcast %307 : vector<1x256xf32> to vector<4x256xf32>
    %310 = arith.mulf %308, %309 : vector<4x256xf32>
    %311 = arith.addf %305, %310 : vector<4x256xf32>
    %c0_115 = arith.constant 0 : index
    %c13_116 = arith.constant 13 : index
    %312 = vector.load %arg3[%c0_115, %c13_116] : memref<4x17xf32, #tpu.memory_space<vmem>>, vector<4x1xf32>
    %313 = vector.extract_strided_slice %133 {offsets = [29, 0], sizes = [1, 256], strides = [1, 1]} : vector<32x256xf32> to vector<1x256xf32>
    %314 = vector.broadcast %312 : vector<4x1xf32> to vector<4x256xf32>
    %315 = vector.broadcast %313 : vector<1x256xf32> to vector<4x256xf32>
    %316 = arith.mulf %314, %315 : vector<4x256xf32>
    %317 = arith.addf %311, %316 : vector<4x256xf32>
    %c0_117 = arith.constant 0 : index
    %c14_118 = arith.constant 14 : index
    %318 = vector.load %arg3[%c0_117, %c14_118] : memref<4x17xf32, #tpu.memory_space<vmem>>, vector<4x1xf32>
    %319 = vector.extract_strided_slice %133 {offsets = [30, 0], sizes = [1, 256], strides = [1, 1]} : vector<32x256xf32> to vector<1x256xf32>
    %320 = vector.broadcast %318 : vector<4x1xf32> to vector<4x256xf32>
    %321 = vector.broadcast %319 : vector<1x256xf32> to vector<4x256xf32>
    %322 = arith.mulf %320, %321 : vector<4x256xf32>
    %323 = arith.addf %317, %322 : vector<4x256xf32>
    %c0_119 = arith.constant 0 : index
    %c15_120 = arith.constant 15 : index
    %324 = vector.load %arg3[%c0_119, %c15_120] : memref<4x17xf32, #tpu.memory_space<vmem>>, vector<4x1xf32>
    %325 = vector.extract_strided_slice %133 {offsets = [31, 0], sizes = [1, 256], strides = [1, 1]} : vector<32x256xf32> to vector<1x256xf32>
    %326 = vector.broadcast %324 : vector<4x1xf32> to vector<4x256xf32>
    %327 = vector.broadcast %325 : vector<1x256xf32> to vector<4x256xf32>
    %328 = arith.mulf %326, %327 : vector<4x256xf32>
    %329 = arith.addf %323, %328 : vector<4x256xf32>
    %330 = vector.broadcast %134 : vector<4x1xf32> to vector<4x256xf32>
    %331 = arith.addf %329, %330 : vector<4x256xf32>
    %c1_121 = arith.constant 1 : index
    %c0_122 = arith.constant 0 : index
    %c0_123 = arith.constant 0 : index
    %332 = vector.load %arg5[%c1_121, %c0_122, %c0_123] : memref<2x4x256xf32, #tpu.memory_space<vmem>>, vector<1x4x256xf32>
    %333 = vector.shape_cast %332 : vector<1x4x256xf32> to vector<4x256xf32>
    %334 = vector.shape_cast %331 : vector<4x256xf32> to vector<1x4x256xf32>
    tpu.vector_store %arg5[%c1_121, %c0_122, %c0_123], %334 {strides = array<i32>} : memref<2x4x256xf32, #tpu.memory_space<vmem>>, vector<1x4x256xf32>,
    return
  }
}

</mosaic_0001>

<bundles_post_ra>
// kernel: tpu_custom_call.1
= control target key start
LH: loop header
LB: loop body
LE: loop exit
PB: predicated region body
PF: predicated region fallthrough
CT: control target
= control target key end

     0   :  { %v2893_v1 = vmov 2   ;;  %v2897_v2 = vmov 1   ;;  %s2877_s0 = inlined_call_operand.vmem [shape: f32[8,256], index: 0, kind: input, shape index: {}]   ;;  %s2878_s1 = inlined_call_operand.vmem [shape: f32[16,4], index: 1, kind: input, shape index: {}]   ;;  %s2879_s2 = inlined_call_operand.vmem [shape: f32[32,11], index: 2, kind: input, shape index: {}]   ;;  %s2880_s3 = inlined_call_operand.vmem [shape: f32[4,17], index: 3, kind: input, shape index: {}]   ;;  %s2881_s4 = inlined_call_operand.vmem [shape: f32[4,256], index: 4, kind: input, shape index: {}]   ;;  %s2882_s5 = inlined_call_operand.hbm [shape: f32[2,4,256], index: 5, kind: output, shape index: {}]  }
   0x1   :  { %v21_v0 = vld [vmem:[%s2878_s1] sm:$0xff]  ;;  %1567 = vset.pattern.permute.xlu0 %v2893_v1  ;;  %1566 = vset.pattern.permute.xlu1 %v2897_v2  ;;  %v22_v3 = vld [vmem:[%s2878_s1 + $0x8] sm:$0xff]  ;;  %v1744_v4 = vld [vmem:[%s2879_s2 + $0x10] sm:$0xff] }
   0x2   :  { %81 = vperm.xlu0 %1567, %v21_v0   ;;  %52 = vperm.xlu1 %1566, %v21_v0  }
   0x3   :  { %10 = vsyncpa [#allocation3], 0  ;;  %v2883_v5 = vmov 9   ;;  %v2895_v6 = vmov 0   ;;  %v2891_v7 = vmov 3   ;;  %v1754_v8 = vld [vmem:[%s2879_s2 + $0x8] sm:$0xff]  ;;  %v35_v14 = vlaneseq }
   0x4   :  { %v1759_v9 = vld [vmem:[%s2879_s2] sm:$0xff]  ;;  %v1769_v10 = vld [vmem:[%s2879_s2 + $0x18] sm:$0xff]  ;;  %v2885_v11 = vmov 6   ;;  %v2901_v12 = vmov 4   ;;  %v2898_v13 = vmov 7   ;;  %s1685_s21 = smov 17  }
   0x5   :  { %v1799_v15 = vshrl.u32 %v35_v14, 7  ;;  %v1528_v18 = vld [vmem:[%s2877_s0 + $0x1] ss:$8 sm:$0x3]  ;;  %s1686_s1 = smov 113   ;;  %s1687_s24 = smov 16  }
   0x6   :  { %1571 = vset.pattern.permute.xlu0 %v2883_v5  ;;  %56 = vperm.xlu1 %1566, %v22_v3   ;;  %v1532_v21 = vld [vmem:[%s2877_s0 + $0x5] ss:$8 sm:$0x3]  ;;  %v23_v22 = vld [vmem:[%s2877_s0] ss:$8 sm:$0x3] }
   0x7   :  { %232 = vperm.xlu0 %1571, %v1744_v4   ;;  %2911 = vst [vmem:[#allocation5_spill] sm:$0xff] %v1799_v15  ;;  %v1805_v19 = vsub.s32 0, %v1799_v15  ;;  %v1808_v20 = vsub.s32 1, %v1799_v15  ;;  %v1531_v23 = vld [vmem:[%s2877_s0 + $0x4] ss:$8 sm:$0x3] }
   0x8   :  { %v1529_v24 = vld [vmem:[%s2877_s0 + $0x2] ss:$8 sm:$0x3]  ;;  %v1533_v25 = vld [vmem:[%s2877_s0 + $0x6] ss:$8 sm:$0x3] }
   0x9   :  { %v63_v28 = vrot.slane %v1528_v18, %v1805_v19  ;;  %v67_v29 = vrot.slane %v1528_v18, %v1808_v20  ;;  %v159_v30 = vrot.slane %v1532_v21, %v1805_v19  ;;  %v163_v31 = vrot.slane %v1532_v21, %v1808_v20  ;;  %v1534_v32 = vld [vmem:[%s2877_s0 + $0x7] ss:$8 sm:$0x3]  ;;  %v1530_v33 = vld [vmem:[%s2877_s0 + $0x3] ss:$8 sm:$0x3] }
   0xa   :  { %1568 = vset.pattern.permute.xlu1 %v2893_v1  ;;  %v38_v34 = vrot.slane %v23_v22, %v1805_v19  ;;  %v42_v35 = vrot.slane %v23_v22, %v1808_v20  ;;  %v142_v36 = vrot.slane %v1531_v23, %v1805_v19  ;;  %v146_v37 = vrot.slane %v1531_v23, %v1808_v20  ;;  %s1684_s0 = smov 1   ;;  %s1688_s25 = smov 112  }
   0xb   :  { %1572 = vset.pattern.permute.xlu0 %v2895_v6  ;;  %85 = vperm.xlu1 %1568, %v22_v3   ;;  %v92_v38 = vrot.slane %v1529_v24, %v1805_v19  ;;  %v96_v39 = vrot.slane %v1529_v24, %v1808_v20  ;;  %v180_v40 = vrot.slane %v1533_v25, %v1805_v19  ;;  %s1689_s26 = smov 15   ;;  %s1690_s27 = smov 127  }
   0xc   :  { %26 = vperm.xlu0 %1572, %v21_v0   ;;  %v184_v41 = vrot.slane %v1533_v25, %v1808_v20  ;;  %v1846_v43 = vrot.slane %v1534_v32, %v1805_v19  ;;  %v1849_v44 = vrot.slane %v1534_v32, %v1808_v20  ;;  %v1852_v45 = vrot.slane %v1530_v33, %v1805_v19  ;;  %s1691_s28 = smov 111  }
   0xd   :  { %v1855_v46 = vrot.slane %v1530_v33, %v1808_v20 }
   0xf   :  { %1569 = vset.pattern.permute.xlu1 %v2891_v7 }
  0x10   :  { %31 = vperm.xlu0 %1572, %v22_v3   ;;  %110 = vperm.xlu1 %1569, %v21_v0  }
  0x14   :  { %393 = vperm.xlu0 %1572, %v1754_v8   ;;  %1570 = vset.pattern.permute.xlu1 %v2883_v5 }
  0x15   :  { %222 = vperm.xlu1 %1570, %v1759_v9  }
  0x18   :  { %1574 = vset.pattern.permute.xlu0 %v2891_v7 }
  0x19   :  { %114 = vperm.xlu0 %1574, %v22_v3   ;;  %227 = vperm.xlu1 %1570, %v1754_v8  }
  0x1d   :  { %438 = vperm.xlu0 %1574, %v1759_v9   ;;  %237 = vperm.xlu1 %1570, %v1769_v10  }
  0x21   :  { %450 = vperm.xlu0 %1574, %v1769_v10   ;;  %1573 = vset.pattern.permute.xlu1 %v2895_v6 }
  0x22   :  { %389 = vperm.xlu1 %1573, %v1759_v9  }
  0x25   :  { %1577 = vset.pattern.permute.xlu0 %v2885_v11 }
  0x26   :  { %397 = vperm.xlu1 %1573, %v1744_v4   ;;  %499 = vperm.xlu0 %1577, %v1754_v8  }
  0x2a   :  { %401 = vperm.xlu1 %1573, %v1769_v10  }
  0x2e   :  { %1575 = vset.pattern.permute.xlu1 %v2891_v7 }
  0x2f   :  { %442 = vperm.xlu1 %1575, %v1754_v8  }
  0x33   :  { %446 = vperm.xlu1 %1575, %v1744_v4  }
  0x37   :  { %1576 = vset.pattern.permute.xlu1 %v2885_v11 }
  0x38   :  { %495 = vperm.xlu1 %1576, %v1759_v9  }
  0x3c   :  { %503 = vperm.xlu1 %1576, %v1744_v4  }
  0x40   :  { %507 = vperm.xlu1 %1576, %v1769_v10  }
  0x44   :  { %1578 = vset.pattern.permute.xlu1 %v2897_v2 }
  0x45   :  { %577 = vperm.xlu1 %1578, %v1754_v8  }
  0x49   :  { %581 = vperm.xlu1 %1578, %v1744_v4  }
  0x4d   :  { %1579 = vset.pattern.permute.xlu1 %v2901_v12 }
  0x4e   :  { %597 = vperm.xlu1 %1579, %v1759_v9  }
  0x52   :  { %605 = vperm.xlu1 %1579, %v1744_v4  }
  0x56   :  { %609 = vperm.xlu1 %1579, %v1769_v10  }
  0x5a   :  { %1580 = vset.pattern.permute.xlu1 %v2898_v13 }
  0x5b   :  { %658 = vperm.xlu1 %1580, %v1754_v8  }
  0x5f   :  { %662 = vperm.xlu1 %1580, %v1744_v4  }
  0x63   :  { %1581 = vset.pattern.permute.xlu1 %v2893_v1 }
  0x81   :  { %v82_v16 = vpop.permute.xlu0 %81  ;;  %v53_v17 = vpop.permute.xlu1 %52 }
  0x82   :  { %v70_v47 = vmul.f32 %v63_v28, %v53_v17  ;;  %v71_v48 = vmul.f32 %v67_v29, %v53_v17  ;;  %v166_v49 = vmul.f32 %v159_v30, %v53_v17  ;;  %v167_v50 = vmul.f32 %v163_v31, %v53_v17 }
  0x83   :  { %v99_v56 = vmul.f32 %v92_v38, %v82_v16  ;;  %v100_v57 = vmul.f32 %v96_v39, %v82_v16  ;;  %v187_v58 = vmul.f32 %v180_v40, %v82_v16  ;;  %v188_v59 = vmul.f32 %v184_v41, %v82_v16 }
  0x85   :  { %v57_v26 = vpop.permute.xlu1 %56 }
  0x86   :  { %v1825_v27 = vpop.permute.xlu0 %232  ;;  %v72_v0 = vmul.f32 %v63_v28, %v57_v26  ;;  %v73_v3 = vmul.f32 %v67_v29, %v57_v26  ;;  %v168_v18 = vmul.f32 %v159_v30, %v57_v26  ;;  %v169_v21 = vmul.f32 %v163_v31, %v57_v26 }
  0x8a   :  { %v86_v42 = vpop.permute.xlu1 %85 }
  0x8b   :  { %v27_v51 = vpop.permute.xlu0 %26 }
  0x8c   :  { %v45_v52 = vmul.f32 %v38_v34, %v27_v51  ;;  %v46_v53 = vmul.f32 %v42_v35, %v27_v51  ;;  %v149_v54 = vmul.f32 %v142_v36, %v27_v51  ;;  %v150_v55 = vmul.f32 %v146_v37, %v27_v51 }
  0x8e   :  { %v170_v60 = vadd.f32 %v166_v49, %v149_v54  ;;  %v171_v61 = vadd.f32 %v167_v50, %v150_v55  ;;  %v74_v62 = vadd.f32 %v70_v47, %v45_v52  ;;  %v75_v63 = vadd.f32 %v71_v48, %v46_v53 }
  0x8f   :  { %v32_v22 = vpop.permute.xlu0 %31  ;;  %v111_v23 = vpop.permute.xlu1 %110  ;;  %v101_v53 = vmul.f32 %v92_v38, %v86_v42  ;;  %v102_v54 = vmul.f32 %v96_v39, %v86_v42 }
  0x90   :  { %v47_v17 = vmul.f32 %v38_v34, %v32_v22  ;;  %v48_v24 = vmul.f32 %v42_v35, %v32_v22  ;;  %v151_v25 = vmul.f32 %v142_v36, %v32_v22  ;;  %v152_v32 = vmul.f32 %v146_v37, %v32_v22 }
  0x91   :  { %v191_v33 = vadd.f32 %v187_v58, %v170_v60  ;;  %v192_v51 = vadd.f32 %v188_v59, %v171_v61  ;;  %v208_v5 = vmul.f32 %v1846_v43, %v111_v23  ;;  %v209_v16 = vmul.f32 %v1849_v44, %v111_v23 }
  0x92   :  { %v103_v49 = vadd.f32 %v99_v56, %v74_v62  ;;  %v104_v50 = vadd.f32 %v100_v57, %v75_v63  ;;  %v128_v47 = vmul.f32 %v1852_v45, %v111_v23  ;;  %v129_v28 = vmul.f32 %v1855_v46, %v111_v23 }
  0x93   :  { %v212_v29 = vadd.f32 %v208_v5, %v191_v33  ;;  %v213_v26 = vadd.f32 %v209_v16, %v192_v51  ;;  %v1861_v30 = vpop.permute.xlu0 %393  ;;  %v76_v31 = vadd.f32 %v72_v0, %v47_v17  ;;  %v77_v34 = vadd.f32 %v73_v3, %v48_v24 }
  0x94   :  { %v132_v35 = vadd.f32 %v128_v47, %v103_v49  ;;  %v133_v36 = vadd.f32 %v129_v28, %v104_v50  ;;  %v223_v37 = vpop.permute.xlu1 %222  ;;  %v172_v48 = vadd.f32 %v168_v18, %v151_v25  ;;  %v173_v52 = vadd.f32 %v169_v21, %v152_v32 }
  0x95   :  { %v1864_v55 = vadd.f32 %v1825_v27, %v212_v29  ;;  %v1867_v56 = vadd.f32 %v1825_v27, %v213_v26  ;;  %v189_v57 = vmul.f32 %v180_v40, %v86_v42  ;;  %v190_v5 = vmul.f32 %v184_v41, %v86_v42 }
  0x96   :  { %v1869_v58 = vadd.f32 %v223_v37, %v132_v35  ;;  %v1871_v59 = vadd.f32 %v223_v37, %v133_v36  ;;  %v105_v38 = vadd.f32 %v101_v53, %v76_v31  ;;  %v106_v39 = vadd.f32 %v102_v54, %v77_v34 }
  0x97   :  { %v260_v60 = vmul.f32 %v1864_v55, %v1864_v55  ;;  %v261_v61 = vmul.f32 %v1867_v56, %v1867_v56  ;;  %v193_v42 = vadd.f32 %v189_v57, %v172_v48  ;;  %v194_v63 = vadd.f32 %v190_v5, %v173_v52 }
  0x98   :  { %v256_v62 = vmul.f32 %v1869_v58, %v1869_v58  ;;  %v257_v27 = vmul.f32 %v1871_v59, %v1871_v59  ;;  %v115_v40 = vpop.permute.xlu0 %114  ;;  %v228_v41 = vpop.permute.xlu1 %227 }
  0x99   :  { %v130_v0 = vmul.f32 %v1852_v45, %v115_v40  ;;  %v131_v3 = vmul.f32 %v1855_v46, %v115_v40  ;;  %v210_v18 = vmul.f32 %v1846_v43, %v115_v40  ;;  %v211_v21 = vmul.f32 %v1849_v44, %v115_v40 }
  0x9a   :  { %v264_v22 = vmul.f32 %v256_v62, %v1869_v58  ;;  %v265_v23 = vmul.f32 %v257_v27, %v1871_v59  ;;  %v268_v17 = vmul.f32 %v260_v60, %v1864_v55  ;;  %v269_v24 = vmul.f32 %v261_v61, %v1867_v56 }
  0x9b   :  { %v134_v25 = vadd.f32 %v130_v0, %v105_v38  ;;  %v135_v32 = vadd.f32 %v131_v3, %v106_v39  ;;  %v214_v33 = vadd.f32 %v210_v18, %v193_v42  ;;  %v215_v51 = vadd.f32 %v211_v21, %v194_v63 }
  0x9c   :  { %v272_v16 = vmul.f32 0.044715, %v264_v22  ;;  %v273_v45 = vmul.f32 0.044715, %v265_v23  ;;  %v238_v49 = vpop.permute.xlu1 %237  ;;  %v276_v46 = vmul.f32 0.044715, %v268_v17 }
  0x9d   :  { %v242_v50 = vadd.f32 %v228_v41, %v134_v25  ;;  %v1889_v43 = vadd.f32 %v228_v41, %v135_v32  ;;  %v1891_v44 = vadd.f32 %v238_v49, %v214_v33  ;;  %v1893_v47 = vadd.f32 %v238_v49, %v215_v51 }
  0x9e   :  { %v280_v28 = vadd.f32 %v272_v16, %v1869_v58  ;;  %v281_v29 = vadd.f32 %v273_v45, %v1871_v59  ;;  %v284_v26 = vadd.f32 %v276_v46, %v1864_v55  ;;  %v277_v31 = vmul.f32 0.044715, %v269_v24 }
  0x9f   :  { %v258_v34 = vmul.f32 %v242_v50, %v242_v50  ;;  %v259_v35 = vmul.f32 %v1889_v43, %v1889_v43  ;;  %v262_v53 = vmul.f32 %v1891_v44, %v1891_v44  ;;  %v263_v54 = vmul.f32 %v1893_v47, %v1893_v47 }
  0xa0   :  { %v288_v36 = vmul.f32 0.7978846, %v280_v28  ;;  %v289_v37 = vmul.f32 0.7978846, %v281_v29  ;;  %v292_v57 = vmul.f32 0.7978846, %v284_v26  ;;  %v285_v5 = vadd.f32 %v277_v31, %v1867_v56 }
  0xa1   :  { %v266_v48 = vmul.f32 %v258_v34, %v242_v50  ;;  %v267_v52 = vmul.f32 %v259_v35, %v1889_v43  ;;  %v270_v38 = vmul.f32 %v262_v53, %v1891_v44  ;;  %v2889_v39 = vmov 5   ;;  %v1535_v53 = vld [vmem:[%s2881_s4 + $0x1] ss:$4 sm:$0x3] }
  0xa2   :  { %1619 = vtanh.f32 %v288_v36  ;;  %1582 = vset.pattern.permute.xlu0 %v2889_v39  ;;  %v271_v62 = vmul.f32 %v263_v54, %v1893_v47  ;;  %v293_v63 = vmul.f32 0.7978846, %v285_v5  ;;  %v248_v17 = vmul.f32 0.5, %v1869_v58 }
  0xa3   :  { %v274_v60 = vmul.f32 0.044715, %v266_v48  ;;  %v275_v61 = vmul.f32 0.044715, %v267_v52  ;;  %1621 = vtanh.f32 %v292_v57  ;;  %v278_v41 = vmul.f32 0.044715, %v270_v38 }
  0xa4   :  { %1623 = vtanh.f32 %v289_v37  ;;  %v279_v42 = vmul.f32 0.044715, %v271_v62  ;;  %v252_v45 = vmul.f32 0.5, %v1864_v55  ;;  %v250_v29 = vmul.f32 0.5, %v242_v50 }
  0xa5   :  { %v282_v27 = vadd.f32 %v274_v60, %v242_v50  ;;  %v283_v40 = vadd.f32 %v275_v61, %v1889_v43  ;;  %v286_v3 = vadd.f32 %v278_v41, %v1891_v44  ;;  %v249_v34 = vmul.f32 0.5, %v1871_v59 }
  0xa6   :  { %v287_v21 = vadd.f32 %v279_v42, %v1893_v47  ;;  %v254_v52 = vmul.f32 0.5, %v1891_v44  ;;  %v253_v59 = vmul.f32 0.5, %v1867_v56  ;;  %v251_v44 = vmul.f32 0.5, %v1889_v43 }
  0xa7   :  { %v290_v0 = vmul.f32 0.7978846, %v282_v27  ;;  %v291_v18 = vmul.f32 0.7978846, %v283_v40  ;;  %v294_v22 = vmul.f32 0.7978846, %v286_v3  ;;  %v346_v56 = vrot.slane %v1535_v53, %v1805_v19 }
  0xa8   :  { %v295_v24 = vmul.f32 0.7978846, %v287_v21  ;;  %v255_v62 = vmul.f32 0.5, %v1893_v47  ;;  %v350_v40 = vrot.slane %v1535_v53, %v1808_v20 }
  0xa9   :  { %1625 = vtanh.f32 %v290_v0 }
  0xaa   :  { %1627 = vtanh.f32 %v293_v63  ;;  %v320_v63 = vld [vmem:[%s2881_s4] ss:$4 sm:$0x3] }
  0xab   :  { %1629 = vtanh.f32 %v294_v22  ;;  %v325_v3 = vrot.slane %v320_v63, %v1805_v19  ;;  %v1980_v22 = vpop.permute.xlu1 %389 }
  0xac   :  { %v1620_v23 = vpop.eup %1619  ;;  %1631 = vtanh.f32 %v291_v18 }
  0xad   :  { %v304_v25 = vadd.f32 1.0, %v1620_v23  ;;  %v1622_v32 = vpop.eup %1621  ;;  %1633 = vtanh.f32 %v295_v24  ;;  %v329_v24 = vrot.slane %v320_v63, %v1808_v20 }
  0xae   :  { %v308_v51 = vadd.f32 1.0, %v1622_v32  ;;  %v1624_v16 = vpop.eup %1623 }
  0xaf   :  { %v1913_v33 = vmul.f32 %v304_v25, %v248_v17  ;;  %v305_v28 = vadd.f32 1.0, %v1624_v16 }
  0xb0   :  { %v1918_v46 = vmul.f32 %v308_v51, %v252_v45  ;;  %v1994_v51 = vpop.permute.xlu1 %397 }
  0xb1   :  { %412 = vrot.lane.b32.xlu0 %v1913_v33, %s1684_s0  ;;  %v1925_v48 = vmul.f32 %v305_v28, %v249_v34  ;;  %v353_v47 = vmul.f32 %v346_v56, %v1913_v33  ;;  %v1989_v25 = vmul.f32 %v325_v3, %v1913_v33 }
  0xb2   :  { %v357_v42 = vmul.f32 %v346_v56, %v1918_v46  ;;  %v1999_v16 = vmul.f32 %v325_v3, %v1918_v46 }
  0xb3   :  { %v1626_v49 = vpop.eup %1625  ;;  %v354_v18 = vmul.f32 %v350_v40, %v1925_v48  ;;  %v2009_v28 = vmul.f32 %v329_v24, %v1925_v48 }
  0xb4   :  { %v1628_v58 = vpop.eup %1627  ;;  %v306_v26 = vadd.f32 1.0, %v1626_v49  ;;  %v2006_v49 = vpop.permute.xlu1 %401 }
  0xb5   :  { %v1630_v31 = vpop.eup %1629  ;;  %416 = vrot.lane.b32.xlu0 %v1918_v46, %s1684_s0  ;;  %v309_v55 = vadd.f32 1.0, %v1628_v58 }
  0xb6   :  { %v1923_v35 = vmul.f32 %v306_v26, %v250_v29  ;;  %v310_v36 = vadd.f32 1.0, %v1630_v31  ;;  %v1632_v37 = vpop.eup %1631 }
  0xb7   :  { %v307_v54 = vadd.f32 1.0, %v1632_v37  ;;  %v1634_v57 = vpop.eup %1633  ;;  %v1938_v5 = vmul.f32 %v309_v55, %v253_v59  ;;  %v2049_v59 = vpop.permute.xlu0 %438 }
  0xb8   :  { %414 = vrot.lane.b32.xlu1 %v1923_v35, %s1684_s0  ;;  %v1933_v50 = vmul.f32 %v310_v36, %v254_v52  ;;  %v311_v61 = vadd.f32 1.0, %v1634_v57  ;;  %v1949_v38 = vmul.f32 %v346_v56, %v1923_v35  ;;  %v1977_v21 = vmul.f32 %v325_v3, %v1923_v35  ;;  %v2015_v29 = vpop.permute.xlu1 %442 }
  0xb9   :  { %420 = vrot.lane.b32.xlu0 %v1925_v48, %s1684_s0  ;;  %v1946_v60 = vmul.f32 %v307_v54, %v251_v44  ;;  %v358_v23 = vmul.f32 %v350_v40, %v1938_v5  ;;  %v2013_v58 = vmul.f32 %v329_v24, %v1938_v5 }
  0xba   :  { %v1955_v43 = vmul.f32 %v311_v61, %v255_v62  ;;  %v1958_v27 = vmul.f32 %v346_v56, %v1933_v50  ;;  %v1984_v17 = vmul.f32 %v325_v3, %v1933_v50 }
  0xbb   :  { %2912 = vst [vmem:[#allocation6_spill] sm:$0xff] %v1946_v60  ;;  %v356_v41 = vmul.f32 %v350_v40, %v1946_v60  ;;  %v1992_v32 = vmul.f32 %v329_v24, %v1946_v60  ;;  %v2056_v54 = vpop.permute.xlu0 %450 }
  0xbc   :  { %418 = vrot.lane.b32.xlu1 %v1933_v50, %s1684_s0  ;;  %v1971_v0 = vmul.f32 %v350_v40, %v1955_v43  ;;  %v2002_v45 = vmul.f32 %v329_v24, %v1955_v43  ;;  %v2019_v26 = vpop.permute.xlu1 %446  ;;  %v2887_v40 = vmov 8   ;;  %v2900_v24 = vmov 10  }
  0xbd   :  { %424 = vrot.lane.b32.xlu0 %v1938_v5, %s1684_s0 }
  0xbf   :  { %v2064_v44 = vpop.permute.xlu0 %499 }
  0xc0   :  { %422 = vrot.lane.b32.xlu1 %v1946_v60, %s1684_s0  ;;  %v2022_v31 = vpop.permute.xlu1 %495 }
  0xc1   :  { %363 = vrot.lane.b32.xlu0 %v1949_v38, %s1685_s21 }
  0xc4   :  { %426 = vrot.lane.b32.xlu1 %v1955_v43, %s1684_s0  ;;  %v2027_v34 = vpop.permute.xlu1 %503 }
  0xc5   :  { %367 = vrot.lane.b32.xlu0 %v1958_v27, %s1685_s21 }
  0xc8   :  { %361 = vrot.lane.b32.xlu1 %v353_v47, %s1685_s21  ;;  %v2031_v36 = vpop.permute.xlu1 %507 }
  0xc9   :  { %371 = vrot.lane.b32.xlu0 %v356_v41, %s1685_s21 }
  0xcc   :  { %365 = vrot.lane.b32.xlu1 %v357_v42, %s1685_s21  ;;  %v2037_v37 = vpop.permute.xlu1 %577 }
  0xcd   :  { %375 = vrot.lane.b32.xlu0 %v1971_v0, %s1685_s21 }
  0xd0   :  { %369 = vrot.lane.b32.xlu1 %v354_v18, %s1685_s21  ;;  %v2041_v55 = vpop.permute.xlu1 %581 }
  0xd1   :  { %471 = vrot.lane.b32.xlu0 %v1977_v21, %s1686_s1 }
  0xd4   :  { %373 = vrot.lane.b32.xlu1 %v358_v23, %s1685_s21  ;;  %v2045_v52 = vpop.permute.xlu1 %597 }
  0xd5   :  { %475 = vrot.lane.b32.xlu0 %v1984_v17, %s1686_s1 }
  0xd8   :  { %469 = vrot.lane.b32.xlu1 %v1989_v25, %s1686_s1  ;;  %v2051_v53 = vpop.permute.xlu1 %605 }
  0xd9   :  { %479 = vrot.lane.b32.xlu0 %v1992_v32, %s1686_s1  ;;  %v617_v15 = vmul.f32 %v2051_v53, %v1938_v5 }
  0xdc   :  { %473 = vrot.lane.b32.xlu1 %v1999_v16, %s1686_s1  ;;  %v2059_v57 = vpop.permute.xlu1 %609 }
  0xdd   :  { %483 = vrot.lane.b32.xlu0 %v2002_v45, %s1686_s1 }
  0xe0   :  { %477 = vrot.lane.b32.xlu1 %v2009_v28, %s1686_s1  ;;  %v2066_v56 = vpop.permute.xlu1 %658 }
  0xe1   :  { %547 = vrot.lane.b32.xlu0 %v353_v47, %s1687_s24 }
  0xe4   :  { %481 = vrot.lane.b32.xlu1 %v2013_v58, %s1686_s1 }
  0xe5   :  { %551 = vrot.lane.b32.xlu0 %v357_v42, %s1687_s24 }
  0xe8   :  { %549 = vrot.lane.b32.xlu1 %v1949_v38, %s1687_s24 }
  0xe9   :  { %555 = vrot.lane.b32.xlu0 %v354_v18, %s1687_s24 }
  0xec   :  { %553 = vrot.lane.b32.xlu1 %v1958_v27, %s1687_s24 }
  0xed   :  { %559 = vrot.lane.b32.xlu0 %v358_v23, %s1687_s24 }
  0xf0   :  { %557 = vrot.lane.b32.xlu1 %v356_v41, %s1687_s24 }
  0xf1   :  { %628 = vrot.lane.b32.xlu0 %v1989_v25, %s1688_s25 }
  0xf4   :  { %561 = vrot.lane.b32.xlu1 %v1971_v0, %s1687_s24 }
  0xf5   :  { %632 = vrot.lane.b32.xlu0 %v1999_v16, %s1688_s25 }
  0xf8   :  { %630 = vrot.lane.b32.xlu1 %v1977_v21, %s1688_s25 }
  0xf9   :  { %636 = vrot.lane.b32.xlu0 %v2009_v28, %s1688_s25 }
  0xfc   :  { %634 = vrot.lane.b32.xlu1 %v1984_v17, %s1688_s25 }
  0xfd   :  { %640 = vrot.lane.b32.xlu0 %v2013_v58, %s1688_s25 }
 0x100   :  { %638 = vrot.lane.b32.xlu1 %v1992_v32, %s1688_s25 }
 0x101   :  { %695 = vrot.lane.b32.xlu0 %v1949_v38, %s1689_s26  ;;  %v2074_v38 = vpop.permute.xlu1 %662 }
 0x104   :  { %642 = vrot.lane.b32.xlu1 %v2002_v45, %s1688_s25 }
 0x105   :  { %699 = vrot.lane.b32.xlu0 %v1958_v27, %s1689_s26 }
 0x108   :  { %693 = vrot.lane.b32.xlu1 %v353_v47, %s1689_s26 }
 0x109   :  { %703 = vrot.lane.b32.xlu0 %v356_v41, %s1689_s26 }
 0x10c   :  { %697 = vrot.lane.b32.xlu1 %v357_v42, %s1689_s26 }
 0x10d   :  { %742 = vrot.lane.b32.xlu0 %v1913_v33, %s1690_s27 }
 0x110   :  { %701 = vrot.lane.b32.xlu1 %v354_v18, %s1689_s26 }
 0x111   :  { %746 = vrot.lane.b32.xlu0 %v1918_v46, %s1690_s27 }
 0x114   :  { %705 = vrot.lane.b32.xlu1 %v358_v23, %s1689_s26 }
 0x115   :  { %750 = vrot.lane.b32.xlu0 %v1925_v48, %s1690_s27 }
 0x118   :  { %719 = vperm.xlu1 %1581, %v1759_v9  }
 0x119   :  { %707 = vrot.lane.b32.xlu0 %v1971_v0, %s1689_s26 }
 0x11c   :  { %727 = vperm.xlu1 %1581, %v1744_v4  }
 0x11d   :  { %754 = vrot.lane.b32.xlu0 %v1938_v5, %s1690_s27 }
 0x120   :  { %731 = vperm.xlu1 %1581, %v1769_v10  }
 0x121   :  { %768 = vperm.xlu0 %1582, %v1759_v9  }
 0x123   :  { %v2070_v61 = vpop.permute.xlu0 %412 }
 0x124   :  { %744 = vrot.lane.b32.xlu1 %v1923_v35, %s1690_s27 }
 0x125   :  { %780 = vperm.xlu0 %1582, %v1769_v10   ;;  %1583 = vset.pattern.permute.xlu1 %v2889_v39 }
 0x127   :  { %v2078_v62 = vpop.permute.xlu0 %416 }
 0x128   :  { %748 = vrot.lane.b32.xlu1 %v1933_v50, %s1690_s27 }
 0x129   :  { %801 = vrot.lane.b32.xlu0 %v1977_v21, %s1691_s28 }
 0x12a   :  { %v415_v27 = vpop.permute.xlu1 %414  ;;  %1585 = vset.pattern.permute.xlu0 %v2887_v40 }
 0x12b   :  { %v2085_v47 = vpop.permute.xlu0 %420 }
 0x12c   :  { %752 = vrot.lane.b32.xlu1 %v1946_v60, %s1690_s27 }
 0x12d   :  { %805 = vrot.lane.b32.xlu0 %v1984_v17, %s1691_s28  ;;  %v2107_v17 = vand.u32 127, %v35_v14 }
 0x12e   :  { %v419_v41 = vpop.permute.xlu1 %418 }
 0x12f   :  { %v2091_v42 = vpop.permute.xlu0 %424  ;;  %vm379_vm0 = vcmp.lt.s32.totalorder %v2107_v17, 17  ;;  %vm428_vm1 = vcmp.lt.s32.totalorder %v2107_v17, 1  ;;  %vm485_vm2 = vcmp.lt.s32.totalorder %v2107_v17, 113  ;;  %vm563_vm3 = vcmp.lt.s32.totalorder %v2107_v17, 16 }
 0x130   :  { %756 = vrot.lane.b32.xlu1 %v1955_v43, %s1690_s27  ;;  %vm644_vm4 = vcmp.lt.s32.totalorder %v2107_v17, 112  ;;  %vm709_vm5 = vcmp.lt.s32.totalorder %v2107_v17, 15  ;;  %vm758_vm6 = vcmp.lt.s32.totalorder %v2107_v17, 127  ;;  %vm815_vm7 = vcmp.lt.s32.totalorder %v2107_v17, 111 }
 0x131   :  { %809 = vrot.lane.b32.xlu0 %v1992_v32, %s1691_s28 }
 0x132   :  { %v423_v63 = vpop.permute.xlu1 %422 }
 0x133   :  { %v364_v0 = vpop.permute.xlu0 %363 }
 0x134   :  { %772 = vperm.xlu1 %1583, %v1754_v8  }
 0x135   :  { %813 = vrot.lane.b32.xlu0 %v2002_v45, %s1691_s28 }
 0x136   :  { %v427_v3 = vpop.permute.xlu1 %426 }
 0x137   :  { %v368_v18 = vpop.permute.xlu0 %367 }
 0x138   :  { %776 = vperm.xlu1 %1583, %v1744_v4  }
 0x139   :  { %829 = vperm.xlu0 %1585, %v1754_v8  }
 0x13a   :  { %v2102_v21 = vpop.permute.xlu1 %361 }
 0x13b   :  { %v372_v23 = vpop.permute.xlu0 %371 }
 0x13c   :  { %799 = vrot.lane.b32.xlu1 %v1989_v25, %s1691_s28  ;;  %v381_v39 = vsel %vm379_vm0, %v364_v0, %v372_v23  ;;  %v385_v7 = vsel %vm379_vm0, %v372_v23, %v364_v0 }
 0x13d   :  { %1586 = vset.pattern.permute.xlu0 %v2900_v24  ;;  %1584 = vset.pattern.permute.xlu1 %v2887_v40  ;;  %v406_v1 = vmul.f32 %v1861_v30, %v385_v7  ;;  %v407_v6 = vmul.f32 %v1861_v30, %v381_v39 }
 0x13e   :  { %886 = vperm.xlu0 %1586, %v1759_v9   ;;  %v2112_v32 = vpop.permute.xlu1 %365 }
 0x13f   :  { %v376_v45 = vpop.permute.xlu0 %375 }
 0x140   :  { %v383_v11 = vsel %vm379_vm0, %v368_v18, %v376_v45  ;;  %v387_v25 = vsel %vm379_vm0, %v376_v45, %v368_v18  ;;  %803 = vrot.lane.b32.xlu1 %v1999_v16, %s1691_s28  ;;  %v430_v16 = vsel %vm428_vm1, %v415_v27, %v423_v63  ;;  %v434_v45 = vsel %vm428_vm1, %v423_v63, %v415_v27 }
 0x141   :  { %v455_v0 = vmul.f32 %v2015_v29, %v434_v45  ;;  %v456_v23 = vmul.f32 %v2015_v29, %v430_v16  ;;  %v432_v27 = vsel %vm428_vm1, %v419_v41, %v427_v3  ;;  %v436_v63 = vsel %vm428_vm1, %v427_v3, %v419_v41  ;;  %v2161_v29 = vld [vmem:[%s2880_s3] sm:$0xf] }
 0x142   :  { %898 = vperm.xlu0 %1586, %v1769_v10   ;;  %v2122_v14 = vpop.permute.xlu1 %369  ;;  %v410_v41 = vmul.f32 %v2006_v49, %v387_v25  ;;  %v411_v3 = vmul.f32 %v2006_v49, %v383_v11 }
 0x143   :  { %v472_v40 = vpop.permute.xlu0 %471  ;;  %v463_v30 = vadd.f32 %v455_v0, %v406_v1  ;;  %v464_v39 = vadd.f32 %v456_v23, %v407_v6  ;;  %v459_v0 = vmul.f32 %v2056_v54, %v436_v63 }
 0x144   :  { %807 = vrot.lane.b32.xlu1 %v2009_v28, %s1691_s28 }
 0x146   :  { %1588 = vset.pattern.permute.xlu0 %v2897_v2  ;;  %v2132_v18 = vpop.permute.xlu1 %373 }
 0x147   :  { %573 = vperm.xlu0 %1588, %v1759_v9   ;;  %v476_v28 = vpop.permute.xlu0 %475 }
 0x148   :  { %811 = vrot.lane.b32.xlu1 %v2013_v58, %s1691_s28 }
 0x14a   :  { %v2146_v2 = vpop.permute.xlu1 %469 }
 0x14b   :  { %585 = vperm.xlu0 %1588, %v1769_v10   ;;  %v480_v7 = vpop.permute.xlu0 %479 }
 0x14c   :  { %v487_v58 = vsel %vm485_vm2, %v472_v40, %v480_v7  ;;  %v491_v45 = vsel %vm485_vm2, %v480_v7, %v472_v40  ;;  %825 = vperm.xlu1 %1584, %v1759_v9   ;;  %v460_v40 = vmul.f32 %v2056_v54, %v432_v27 }
 0x14d   :  { %v512_v1 = vmul.f32 %v2064_v44, %v487_v58  ;;  %v513_v6 = vmul.f32 %v2064_v44, %v491_v45  ;;  %v467_v44 = vadd.f32 %v459_v0, %v410_v41 }
 0x14e   :  { %v2167_v16 = vpop.permute.xlu1 %473  ;;  %v468_v25 = vadd.f32 %v460_v40, %v411_v3 }
 0x14f   :  { %v2171_v23 = vadd.f32 %v512_v1, %v463_v30  ;;  %v2173_v7 = vadd.f32 %v513_v6, %v464_v39  ;;  %998 = vperm.xlu0 %1588, %v2161_v29   ;;  %v484_v13 = vpop.permute.xlu0 %483  ;;  %v2917_v1 = vmov 7  }
 0x150   :  { %v489_v11 = vsel %vm485_vm2, %v476_v28, %v484_v13  ;;  %v493_v49 = vsel %vm485_vm2, %v484_v13, %v476_v28  ;;  %833 = vperm.xlu1 %1584, %v1744_v4  }
 0x151   :  { %v516_v63 = vmul.f32 %v2031_v36, %v489_v11  ;;  %v517_v54 = vmul.f32 %v2031_v36, %v493_v49  ;;  %v2919_v49 = vmov 0  }
 0x152   :  { %v2183_v27 = vpop.permute.xlu1 %477 }
 0x153   :  { %v2185_v30 = vadd.f32 %v516_v63, %v467_v44  ;;  %v2187_v39 = vadd.f32 %v517_v54, %v468_v25  ;;  %1590 = vset.pattern.permute.xlu0 %v2901_v12  ;;  %v548_v58 = vpop.permute.xlu0 %547  ;;  %v616_v12 = vmul.f32 %v2051_v53, %v1918_v46 }
 0x154   :  { %601 = vperm.xlu0 %1590, %v1754_v8   ;;  %837 = vperm.xlu1 %1584, %v1769_v10  }
 0x155   :  { %2913 = vst [vmem:[#allocation7_spill] sm:$0xff] %v2185_v30  ;;  %2914 = vst [vmem:[#allocation8_spill] sm:$0xff] %v2187_v39  ;;  %v2906_v39 = vmov 14  }
 0x156   :  { %v2192_v13 = vpop.permute.xlu1 %481 }
 0x157   :  { %v552_v28 = vpop.permute.xlu0 %551 }
 0x158   :  { %1046 = vperm.xlu0 %1590, %v2161_v29   ;;  %1587 = vset.pattern.permute.xlu1 %v2900_v24 }
 0x159   :  { %890 = vperm.xlu1 %1587, %v1754_v8  }
 0x15a   :  { %v2198_v36 = vpop.permute.xlu1 %549 }
 0x15b   :  { %v556_v45 = vpop.permute.xlu0 %555 }
 0x15c   :  { %v2202_v41 = vsel %vm563_vm3, %v548_v58, %v556_v45  ;;  %v2206_v3 = vsel %vm563_vm3, %v556_v45, %v548_v58  ;;  %1593 = vset.pattern.permute.xlu0 %v2917_v1  ;;  %v2922_v58 = vmov 3  }
 0x15d   :  { %2915 = vst [vmem:[#allocation9_spill] sm:$0xff] %v2202_v41  ;;  %2916 = vst [vmem:[#allocation10_spill] sm:$0xff] %v2206_v3  ;;  %654 = vperm.xlu0 %1593, %v1759_v9   ;;  %894 = vperm.xlu1 %1587, %v1744_v4   ;;  %v2920_v4 = vmov 2  }
 0x15e   :  { %v2211_v6 = vpop.permute.xlu1 %553 }
 0x15f   :  { %2918 = vst [vmem:[#allocation11_spill] sm:$0xff] %v2211_v6  ;;  %v560_v0 = vpop.permute.xlu0 %559 }
 0x160   :  { %v566_v40 = vsel %vm563_vm3, %v552_v28, %v560_v0  ;;  %v570_v11 = vsel %vm563_vm3, %v560_v0, %v552_v28  ;;  %v2234_v28 = vld [vmem:[%s2880_s3] sm:$0xf] }
 0x161   :  { %666 = vperm.xlu0 %1593, %v1769_v10   ;;  %1589 = vset.pattern.permute.xlu1 %v2919_v49 }
 0x162   :  { %984 = vperm.xlu1 %1589, %v2161_v29   ;;  %v2220_v44 = vpop.permute.xlu1 %557 }
 0x163   :  { %v629_v9 = vpop.permute.xlu0 %628 }
 0x165   :  { %1094 = vperm.xlu0 %1593, %v2161_v29  }
 0x166   :  { %1591 = vset.pattern.permute.xlu1 %v2920_v4  ;;  %v2224_v25 = vpop.permute.xlu1 %561 }
 0x167   :  { %2921 = vst [vmem:[#allocation12_spill] sm:$0xff] %v2224_v25  ;;  %v633_v63 = vpop.permute.xlu0 %632  ;;  %1014 = vperm.xlu1 %1591, %v2161_v29  }
 0x169   :  { %1596 = vset.pattern.permute.xlu0 %v2920_v4  ;;  %v593_v4 = vmul.f32 %v2041_v55, %v566_v40 }
 0x16a   :  { %723 = vperm.xlu0 %1596, %v1754_v8   ;;  %v631_v10 = vpop.permute.xlu1 %630  ;;  %v592_v8 = vmul.f32 %v2041_v55, %v570_v11 }
 0x16b   :  { %v637_v54 = vpop.permute.xlu0 %636  ;;  %1592 = vset.pattern.permute.xlu1 %v2922_v58  ;;  %v625_v55 = vadd.f32 %v617_v15, %v593_v4 }
 0x16c   :  { %v2238_v45 = vsel %vm644_vm4, %v629_v9, %v637_v54  ;;  %v2242_v0 = vsel %vm644_vm4, %v637_v54, %v629_v9  ;;  %1030 = vperm.xlu1 %1592, %v2161_v29   ;;  %v624_v11 = vadd.f32 %v616_v12, %v592_v8 }
 0x16d   :  { %2923 = vst [vmem:[#allocation13_spill] sm:$0xff] %v2238_v45  ;;  %2924 = vst [vmem:[#allocation14_spill] sm:$0xff] %v2242_v0  ;;  %v2925_v0 = vmov 5  }
 0x16e   :  { %1281 = vperm.xlu0 %1596, %v2234_v28   ;;  %v635_v24 = vpop.permute.xlu1 %634 }
 0x16f   :  { %v641_v45 = vpop.permute.xlu0 %640 }
 0x170   :  { %v647_v9 = vsel %vm644_vm4, %v633_v63, %v641_v45  ;;  %v651_v54 = vsel %vm644_vm4, %v641_v45, %v633_v63  ;;  %1594 = vset.pattern.permute.xlu1 %v2925_v0 }
 0x171   :  { %v673_v40 = vmul.f32 %v2074_v38, %v647_v9  ;;  %v674_v6 = vmul.f32 %v2074_v38, %v651_v54  ;;  %1062 = vperm.xlu1 %1594, %v2161_v29   ;;  %v2928_v38 = vmov 6  }
 0x172   :  { %1601 = vset.pattern.permute.xlu0 %v2925_v0  ;;  %v639_v46 = vpop.permute.xlu1 %638  ;;  %v2929_v0 = vmov 8  }
 0x173   :  { %v2261_v5 = vadd.f32 %v673_v40, %v624_v11  ;;  %v2263_v53 = vadd.f32 %v674_v6, %v625_v55  ;;  %1329 = vperm.xlu0 %1601, %v2234_v28   ;;  %v696_v63 = vpop.permute.xlu0 %695  ;;  %v2268_v12 = vsel %vm644_vm4, %v631_v10, %v639_v46  ;;  %v2272_v15 = vsel %vm644_vm4, %v639_v46, %v631_v10 }
 0x174   :  { %v2935_v46 = vmov 1  }
 0x175   :  { %2926 = vst [vmem:[#allocation15_spill] sm:$0xff] %v2261_v5  ;;  %2927 = vst [vmem:[#allocation16_spill] sm:$0xff] %v2263_v53  ;;  %1595 = vset.pattern.permute.xlu1 %v2928_v38 }
 0x176   :  { %1078 = vperm.xlu1 %1595, %v2161_v29   ;;  %v643_v45 = vpop.permute.xlu1 %642 }
 0x177   :  { %1604 = vset.pattern.permute.xlu0 %v2929_v0  ;;  %v700_v6 = vpop.permute.xlu0 %699  ;;  %v2279_v8 = vsel %vm644_vm4, %v635_v24, %v643_v45  ;;  %v2283_v4 = vsel %vm644_vm4, %v643_v45, %v635_v24  ;;  %v2934_v24 = vmov 9  }
 0x178   :  { %2930 = vst [vmem:[#allocation17_spill] sm:$0xff] %v2279_v8  ;;  %2931 = vst [vmem:[#allocation18_spill] sm:$0xff] %v2283_v4  ;;  %1110 = vperm.xlu0 %1604, %v2161_v29  }
 0x17a   :  { %1597 = vset.pattern.permute.xlu1 %v2919_v49  ;;  %v694_v10 = vpop.permute.xlu1 %693  ;;  %v1694_v49 = vmov 11  }
 0x17b   :  { %v704_v9 = vpop.permute.xlu0 %703  ;;  %1251 = vperm.xlu1 %1597, %v2234_v28  }
 0x17c   :  { %v2291_v54 = vsel %vm709_vm5, %v696_v63, %v704_v9  ;;  %v2295_v11 = vsel %vm709_vm5, %v704_v9, %v696_v63  ;;  %1607 = vset.pattern.permute.xlu0 %v2934_v24 }
 0x17d   :  { %2932 = vst [vmem:[#allocation19_spill] sm:$0xff] %v2291_v54  ;;  %2933 = vst [vmem:[#allocation20_spill] sm:$0xff] %v2295_v11  ;;  %1393 = vperm.xlu0 %1607, %v2234_v28  }
 0x17e   :  { %v698_v55 = vpop.permute.xlu1 %697 }
 0x17f   :  { %v743_v40 = vpop.permute.xlu0 %742  ;;  %1598 = vset.pattern.permute.xlu1 %v2935_v46  ;;  %v1695_v46 = vmov 12  }
 0x180   :  { %1265 = vperm.xlu1 %1598, %v2234_v28  }
 0x181   :  { %1609 = vset.pattern.permute.xlu0 %v1694_v49 }
 0x182   :  { %1158 = vperm.xlu0 %1609, %v2161_v29   ;;  %v702_v45 = vpop.permute.xlu1 %701 }
 0x183   :  { %v2302_v54 = vpop.permute.xlu0 %746  ;;  %v710_v63 = vsel %vm709_vm5, %v694_v10, %v702_v45  ;;  %v714_v9 = vsel %vm709_vm5, %v702_v45, %v694_v10  ;;  %v2936_v45 = vmov 4  }
 0x184   :  { %1599 = vset.pattern.permute.xlu1 %v2922_v58 }
 0x185   :  { %1297 = vperm.xlu1 %1599, %v2234_v28  }
 0x186   :  { %1612 = vset.pattern.permute.xlu0 %v1695_v46  ;;  %v706_v11 = vpop.permute.xlu1 %705 }
 0x187   :  { %1441 = vperm.xlu0 %1612, %v2234_v28   ;;  %v751_v4 = vpop.permute.xlu0 %750  ;;  %v712_v8 = vsel %vm709_vm5, %v698_v55, %v706_v11  ;;  %v716_v25 = vsel %vm709_vm5, %v706_v11, %v698_v55 }
 0x188   :  { %v759_v10 = vsel %vm758_vm6, %v743_v40, %v751_v4  ;;  %v763_v58 = vsel %vm758_vm6, %v751_v4, %v743_v40  ;;  %v2907_v4 = vmov 15  }
 0x189   :  { %1600 = vset.pattern.permute.xlu1 %v2936_v45 }
 0x18a   :  { %1313 = vperm.xlu1 %1600, %v2234_v28  }
 0x18b   :  { %1614 = vset.pattern.permute.xlu0 %v2906_v39  ;;  %v708_v30 = vpop.permute.xlu0 %707 }
 0x18c   :  { %v713_v41 = vsel %vm709_vm5, %v700_v6, %v708_v30  ;;  %v717_v11 = vsel %vm709_vm5, %v708_v30, %v700_v6  ;;  %1206 = vperm.xlu0 %1614, %v2161_v29  }
 0x18e   :  { %1602 = vset.pattern.permute.xlu1 %v2928_v38 }
 0x18f   :  { %1345 = vperm.xlu1 %1602, %v2234_v28   ;;  %v755_v38 = vpop.permute.xlu0 %754 }
 0x190   :  { %1617 = vset.pattern.permute.xlu0 %v2907_v4 }
 0x191   :  { %1489 = vperm.xlu0 %1617, %v2234_v28  }
 0x193   :  { %1603 = vset.pattern.permute.xlu1 %v2917_v1 }
 0x194   :  { %1361 = vperm.xlu1 %1603, %v2234_v28  }
 0x197   :  { %v720_v55 = vpop.permute.xlu1 %719 }
 0x198   :  { %v734_v40 = vmul.f32 %v720_v55, %v714_v9  ;;  %v735_v45 = vmul.f32 %v720_v55, %v710_v63  ;;  %1605 = vset.pattern.permute.xlu1 %v2929_v0  ;;  %v2937_v9 = vmov 10  }
 0x199   :  { %1377 = vperm.xlu1 %1605, %v2234_v28  }
 0x19b   :  { %v728_v30 = vpop.permute.xlu1 %727 }
 0x19c   :  { %v738_v6 = vmul.f32 %v728_v30, %v716_v25  ;;  %v739_v39 = vmul.f32 %v728_v30, %v712_v8 }
 0x19d   :  { %1606 = vset.pattern.permute.xlu1 %v2934_v24 }
 0x19e   :  { %1126 = vperm.xlu1 %1606, %v2161_v29  }
 0x19f   :  { %v732_v4 = vpop.permute.xlu1 %731 }
 0x1a0   :  { %v769_v3 = vpop.permute.xlu0 %768  ;;  %v740_v1 = vmul.f32 %v732_v4, %v717_v11  ;;  %v741_v53 = vmul.f32 %v732_v4, %v713_v41 }
 0x1a1   :  { %v783_v5 = vmul.f32 %v769_v3, %v759_v10  ;;  %v784_v60 = vmul.f32 %v769_v3, %v763_v58 }
 0x1a2   :  { %1608 = vset.pattern.permute.xlu1 %v2937_v9 }
 0x1a3   :  { %v2339_v63 = vadd.f32 %v783_v5, %v734_v40  ;;  %v2341_v0 = vadd.f32 %v784_v60, %v735_v45  ;;  %1142 = vperm.xlu1 %1608, %v2161_v29   ;;  %v745_v25 = vpop.permute.xlu1 %744 }
 0x1a4   :  { %v781_v8 = vpop.permute.xlu0 %780 }
 0x1a7   :  { %1409 = vperm.xlu1 %1608, %v2234_v28   ;;  %v749_v24 = vpop.permute.xlu1 %748 }
 0x1a8   :  { %v2345_v55 = vpop.permute.xlu0 %801 }
 0x1a9   :  { %2938 = vst [vmem:[#allocation21_spill] sm:$0xff] %v2345_v55 }
 0x1ab   :  { %1610 = vset.pattern.permute.xlu1 %v1694_v49  ;;  %v753_v11 = vpop.permute.xlu1 %752 }
 0x1ac   :  { %v2347_v41 = vpop.permute.xlu0 %805  ;;  %v760_v3 = vsel %vm758_vm6, %v745_v25, %v753_v11  ;;  %v764_v60 = vsel %vm758_vm6, %v753_v11, %v745_v25  ;;  %1425 = vperm.xlu1 %1610, %v2234_v28  }
 0x1af   :  { %v757_v5 = vpop.permute.xlu1 %756 }
 0x1b0   :  { %v2354_v10 = vpop.permute.xlu0 %809  ;;  %v762_v58 = vsel %vm758_vm6, %v749_v24, %v757_v5  ;;  %v766_v49 = vsel %vm758_vm6, %v757_v5, %v749_v24  ;;  %1611 = vset.pattern.permute.xlu1 %v1695_v46  ;;  %v761_v46 = vsel %vm758_vm6, %v2302_v54, %v755_v38 }
 0x1b1   :  { %2939 = vst [vmem:[#allocation22_spill] sm:$0xff] %v2354_v10  ;;  %v789_v4 = vmul.f32 %v781_v8, %v762_v58  ;;  %v790_v40 = vmul.f32 %v781_v8, %v766_v49  ;;  %1174 = vperm.xlu1 %1611, %v2161_v29   ;;  %v1698_v10 = vmov 13   ;;  %v2942_v49 = vmov 14  }
 0x1b3   :  { %v2361_v45 = vadd.f32 %v789_v4, %v740_v1  ;;  %v2363_v30 = vadd.f32 %v790_v40, %v741_v53  ;;  %v773_v9 = vpop.permute.xlu1 %772  ;;  %v765_v53 = vsel %vm758_vm6, %v755_v38, %v2302_v54  ;;  %v2943_v4 = vmov 15  }
 0x1b4   :  { %v2365_v25 = vpop.permute.xlu0 %813  ;;  %v2367_v11 = vmul.f32 %v773_v9, %v760_v3  ;;  %v2369_v55 = vmul.f32 %v773_v9, %v764_v60 }
 0x1b5   :  { %1613 = vset.pattern.permute.xlu1 %v1698_v10 }
 0x1b6   :  { %2940 = vst [vmem:[#allocation23_spill] sm:$0xff] %v2367_v11  ;;  %2941 = vst [vmem:[#allocation24_spill] sm:$0xff] %v2369_v55  ;;  %1190 = vperm.xlu1 %1613, %v2161_v29  }
 0x1b7   :  { %v777_v1 = vpop.permute.xlu1 %776 }
 0x1b8   :  { %v787_v8 = vmul.f32 %v777_v1, %v761_v46  ;;  %v788_v24 = vmul.f32 %v777_v1, %v765_v53  ;;  %v2378_v5 = vpop.permute.xlu0 %829  ;;  %v380_v46 = vsel %vm379_vm0, %v2102_v21, %v2122_v14  ;;  %v384_v53 = vsel %vm379_vm0, %v2122_v14, %v2102_v21 }
 0x1b9   :  { %v492_v21 = vsel %vm485_vm2, %v2192_v13, %v2167_v16  ;;  %v1699_v14 = vmov 16  }
 0x1ba   :  { %v2380_v3 = vadd.f32 %v787_v8, %v738_v6  ;;  %v2382_v60 = vadd.f32 %v788_v24, %v739_v39  ;;  %1457 = vperm.xlu1 %1613, %v2234_v28   ;;  %v1536_v39 = vld [vmem:[%s2881_s4 + $0x2] ss:$4 sm:$0x3]  ;;  %v382_v6 = vsel %vm379_vm0, %v2112_v32, %v2132_v18  ;;  %v488_v24 = vsel %vm485_vm2, %v2167_v16, %v2192_v13 }
 0x1bb   :  { %v2385_v10 = vpop.permute.xlu1 %799  ;;  %v2419_v1 = vrot.slane %v1536_v39, %v1805_v19  ;;  %v2450_v16 = vmul.f32 %v2045_v52, %v1913_v33  ;;  %v404_v13 = vmul.f32 %v1980_v22, %v384_v53  ;;  %v2455_v55 = vrot.slane %v1536_v39, %v1808_v20 }
 0x1bc   :  { %v2465_v33 = vmul.f32 %v2045_v52, %v1925_v48  ;;  %v486_v48 = vsel %vm485_vm2, %v2146_v2, %v2183_v27 }
 0x1bd   :  { %v2387_v58 = vpop.permute.xlu0 %886 }
 0x1be   :  { %1615 = vset.pattern.permute.xlu1 %v2942_v49  ;;  %v429_v49 = vsel %vm428_vm1, %v2070_v61, %v2085_v47 }
 0x1bf   :  { %1473 = vperm.xlu1 %1615, %v2234_v28   ;;  %v804_v54 = vpop.permute.xlu1 %803  ;;  %v386_v28 = vsel %vm379_vm0, %v2132_v18, %v2112_v32  ;;  %v431_v32 = vsel %vm428_vm1, %v2078_v62, %v2091_v42  ;;  %v435_v18 = vsel %vm428_vm1, %v2091_v42, %v2078_v62  ;;  %v433_v62 = vsel %vm428_vm1, %v2085_v47, %v2070_v61 }
 0x1c0   :  { %v408_v42 = vmul.f32 %v1994_v51, %v386_v28  ;;  %v457_v61 = vmul.f32 %v2019_v26, %v435_v18  ;;  %v458_v47 = vmul.f32 %v2019_v26, %v431_v32  ;;  %v453_v39 = vmul.f32 %v2049_v59, %v433_v62 }
 0x1c1   :  { %v2391_v38 = vpop.permute.xlu0 %898  ;;  %v454_v28 = vmul.f32 %v2049_v59, %v429_v49  ;;  %v2475_v26 = vmul.f32 %v2059_v57, %v1955_v43  ;;  %v1537_v43 = vld [vmem:[%s2881_s4 + $0x3] ss:$4 sm:$0x3]  ;;  %s1700_s4 = smov [#allocation2]  }
 0x1c2   :  { %s1517_s10 = sshll.u32 %s1700_s4, 4  ;;  %s1518_s10 = int_to_ptr.vmem [resolvable:$true] %s1517_s10 }
 0x1c3   :  { %1616 = vset.pattern.permute.xlu1 %v2943_v4  ;;  %v2394_v40 = vpop.permute.xlu1 %807  ;;  %v409_v4 = vmul.f32 %v1994_v51, %v382_v6  ;;  %v514_v51 = vmul.f32 %v2027_v34, %v488_v24  ;;  %s1651_s11 = scalar_lea.vmem %s1518_s10, 256  ;;  %p1656_p1 = scmp.lt.s32.totalorder %s1518_s10, %s1518_s10 }
 0x1c4   :  { %1222 = vperm.xlu1 %1616, %v2161_v29   ;;  %p1652_p0 = scmp.ne.s32.totalorder %s1518_s10, %s1651_s11  ;;  %p1657_p2 = scmp.lt.s32.totalorder %s1651_s11, %s1651_s11 }
 0x1c5   :  { %v466_v53 = vadd.f32 %v458_v47, %v409_v4  ;;  %v542_v4 = vmul.f32 %v2455_v55, %v2173_v7 }
 0x1c6   :  { %v2408_v9 = vpop.permute.xlu0 %573  ;;  %p1658_p3 = por %p1657_p2, %p1656_p1 }
 0x1c7   :  { %v812_v8 = vpop.permute.xlu1 %811 }
 0x1c8   :  { %1618 = vset.pattern.permute.xlu1 %v1699_v14  ;;  %v405_v14 = vmul.f32 %v1980_v22, %v380_v46  ;;  %v2469_v22 = vmul.f32 %v2059_v57, %v1933_v50  ;;  %v465_v46 = vadd.f32 %v457_v61, %v408_v42  ;;  %v490_v50 = vsel %vm485_vm2, %v2183_v27, %v2146_v2  ;;  %p1659_p4 = pnand %p1658_p3, %p1652_p0 }
 0x1c9   :  { %1238 = vperm.xlu1 %1618, %v2161_v29   ;;  %v515_v29 = vmul.f32 %v2027_v34, %v492_v21  ;;  %v461_v34 = vadd.f32 %v453_v39, %v404_v13  ;;  %v818_v18 = vsel %vm815_vm7, %v804_v54, %v812_v8  ;;  %v822_v24 = vsel %vm815_vm7, %v812_v8, %v804_v54 }
 0x1ca   :  { %v2457_v11 = vpop.permute.xlu0 %585  ;;  %v462_v32 = vadd.f32 %v454_v28, %v405_v14  ;;  %v522_v59 = vadd.f32 %v514_v51, %v465_v46  ;;  %v565_v2 = vsel %vm563_vm3, %v2198_v36, %v2220_v44  ;;  %v569_v27 = vsel %vm563_vm3, %v2220_v44, %v2198_v36  ;;  %v2944_v28 = vld [vmem:[#allocation6_spill] sm:$0xff]  ;;  %v2945_v46 = vld [vmem:[#allocation15_spill] sm:$0xff] }
 0x1cb   :  { %v826_v6 = vpop.permute.xlu1 %825  ;;  %v523_v57 = vadd.f32 %v515_v29, %v466_v53  ;;  %v541_v42 = vmul.f32 %v2419_v1, %v2171_v23  ;;  %v2508_v54 = vrot.slane %v1537_v43, %v1805_v19  ;;  %v2511_v8 = vrot.slane %v1537_v43, %v1808_v20 }
 0x1cc   :  { %v510_v13 = vmul.f32 %v2022_v31, %v486_v48  ;;  %v511_v14 = vmul.f32 %v2022_v31, %v490_v50  ;;  %v590_v61 = vmul.f32 %v2037_v37, %v569_v27  ;;  %v591_v23 = vmul.f32 %v2037_v37, %v565_v2  ;;  %v2946_v48 = vld [vmem:[#allocation16_spill] sm:$0xff] }
 0x1cd   :  { %v543_v51 = vmul.f32 %v2419_v1, %v522_v59  ;;  %v544_v29 = vmul.f32 %v2455_v55, %v523_v57  ;;  %v671_v39 = vmul.f32 %v2066_v56, %v2268_v12  ;;  %v672_v31 = vmul.f32 %v2066_v56, %v2272_v15  ;;  %v2947_v59 = vld [vmem:[#allocation10_spill] sm:$0xff] }
 0x1ce   :  { %v2489_v52 = vpop.permute.xlu0 %998  ;;  %v816_v12 = vsel %vm815_vm7, %v2385_v10, %v2394_v40  ;;  %v588_v57 = vmul.f32 %v2408_v9, %v2947_v59 }
 0x1cf   :  { %v834_v21 = vpop.permute.xlu1 %833  ;;  %v689_v53 = vadd.f32 %v2945_v46, %v543_v51  ;;  %v690_v37 = vadd.f32 %v2946_v48, %v544_v29  ;;  %v2949_v51 = vld [vmem:[#allocation7_spill] sm:$0xff]  ;;  %v519_v29 = vadd.f32 %v511_v14, %v462_v32  ;;  %v823_v32 = vsel %vm815_vm7, %v2365_v25, %v2347_v41 }
 0x1d0   :  { %v844_v49 = vmul.f32 %v834_v21, %v818_v18  ;;  %v845_v62 = vmul.f32 %v834_v21, %v822_v24  ;;  %v2948_v18 = vld [vmem:[#allocation9_spill] sm:$0xff] }
 0x1d1   :  { %v589_v24 = vmul.f32 %v2408_v9, %v2948_v18  ;;  %v2952_v9 = vld [vmem:[#allocation11_spill] sm:$0xff] }
 0x1d2   :  { %v852_v36 = vadd.f32 %v844_v49, %v2380_v3  ;;  %v853_v44 = vadd.f32 %v845_v62, %v2382_v60  ;;  %v840_v49 = vmul.f32 %v826_v6, %v816_v12 }
 0x1d3   :  { %v602_v47 = vpop.permute.xlu0 %601  ;;  %v838_v7 = vpop.permute.xlu1 %837 }
 0x1d4   :  { %v614_v3 = vmul.f32 %v602_v47, %v1923_v35  ;;  %v615_v60 = vmul.f32 %v602_v47, %v2944_v28  ;;  %v873_v50 = vmul.f32 %v2508_v54, %v852_v36  ;;  %v874_v43 = vmul.f32 %v2511_v8, %v853_v44 }
 0x1d5   :  { %v820_v35 = vsel %vm815_vm7, %v2394_v40, %v2385_v10  ;;  %v545_v10 = vmul.f32 %v2419_v1, %v2949_v51  ;;  %v2950_v40 = vld [vmem:[#allocation8_spill] sm:$0xff] }
 0x1d6   :  { %v622_v56 = vadd.f32 %v614_v3, %v590_v61  ;;  %v623_v15 = vadd.f32 %v615_v60, %v591_v23  ;;  %v881_v2 = vadd.f32 %v873_v50, %v689_v53  ;;  %v882_v27 = vadd.f32 %v874_v43, %v690_v37  ;;  %v2951_v3 = vld [vmem:[#allocation12_spill] sm:$0xff]  ;;  %v2953_v37 = vld [vmem:[#allocation13_spill] sm:$0xff]  ;;  %v2954_v43 = vld [vmem:[#allocation14_spill] sm:$0xff] }
 0x1d7   :  { %v2543_v21 = vpop.permute.xlu0 %1046  ;;  %v841_v62 = vmul.f32 %v826_v6, %v820_v35  ;;  %v546_v61 = vmul.f32 %v2455_v55, %v2950_v40  ;;  %v518_v23 = vadd.f32 %v510_v13, %v461_v34  ;;  %v567_v28 = vsel %vm563_vm3, %v2952_v9, %v2951_v3 }
 0x1d8   :  { %v679_v36 = vadd.f32 %v671_v39, %v622_v56  ;;  %v680_v44 = vadd.f32 %v672_v31, %v623_v15  ;;  %v2545_v47 = vpop.permute.xlu1 %890  ;;  %v571_v6 = vsel %vm563_vm3, %v2951_v3, %v2952_v9  ;;  %v819_v34 = vsel %vm815_vm7, %v2347_v41, %v2365_v25 }
 0x1d9   :  { %v594_v13 = vmul.f32 %v2457_v11, %v571_v6  ;;  %v595_v14 = vmul.f32 %v2457_v11, %v567_v28  ;;  %v620_v60 = vadd.f32 %v2450_v16, %v588_v57  ;;  %v849_v46 = vadd.f32 %v841_v62, %v2341_v0 }
 0x1da   :  { %v2559_v39 = vadd.f32 %v679_v36, %v541_v42  ;;  %v2561_v31 = vadd.f32 %v680_v44, %v542_v4  ;;  %v621_v42 = vadd.f32 %v2465_v33, %v589_v24  ;;  %v848_v4 = vadd.f32 %v840_v49, %v2339_v63 }
 0x1db   :  { %v846_v25 = vmul.f32 %v838_v7, %v819_v34  ;;  %v847_v11 = vmul.f32 %v838_v7, %v823_v32  ;;  %v539_v16 = vmul.f32 %v2419_v1, %v518_v23  ;;  %v540_v33 = vmul.f32 %v2455_v55, %v519_v29  ;;  %v2955_v55 = vld [vmem:[#allocation17_spill] sm:$0xff] }
 0x1dc   :  { %v655_v53 = vpop.permute.xlu0 %654  ;;  %v895_v48 = vpop.permute.xlu1 %894  ;;  %v626_v63 = vadd.f32 %v2469_v22, %v594_v13  ;;  %v627_v0 = vadd.f32 %v2475_v26, %v595_v14  ;;  %v869_v59 = vmul.f32 %v2508_v54, %v848_v4  ;;  %v870_v57 = vmul.f32 %v2511_v8, %v849_v46  ;;  %v2956_v22 = vld [vmem:[#allocation18_spill] sm:$0xff] }
 0x1dd   :  { %v669_v50 = vmul.f32 %v655_v53, %v2953_v37  ;;  %v670_v12 = vmul.f32 %v655_v53, %v2954_v43  ;;  %v2579_v35 = vadd.f32 %v895_v48, %v881_v2  ;;  %v2581_v41 = vadd.f32 %v895_v48, %v882_v27  ;;  %v2957_v37 = vld [vmem:[#allocation22_spill] sm:$0xff] }
 0x1de   :  { %v854_v62 = vadd.f32 %v846_v25, %v2361_v45  ;;  %v855_v36 = vadd.f32 %v847_v11, %v2363_v30 }
 0x1df   :  { %v677_v56 = vadd.f32 %v669_v50, %v620_v60  ;;  %v678_v15 = vadd.f32 %v670_v12, %v621_v42  ;;  %v921_v18 = vmul.f32 %v2579_v35, %v2579_v35  ;;  %v922_v7 = vmul.f32 %v2581_v41, %v2581_v41  ;;  %v2958_v50 = vld [vmem:[#allocation21_spill] sm:$0xff] }
 0x1e0   :  { %v667_v24 = vpop.permute.xlu0 %666  ;;  %v875_v13 = vmul.f32 %v2508_v54, %v854_v62  ;;  %v876_v14 = vmul.f32 %v2511_v8, %v855_v36  ;;  %v817_v43 = vsel %vm815_vm7, %v2958_v50, %v2957_v37  ;;  %v821_v12 = vsel %vm815_vm7, %v2957_v37, %v2958_v50  ;;  %v2963_v37 = vld [vmem:[#allocation5_spill] sm:$0xff] }
 0x1e1   :  { %v685_v1 = vadd.f32 %v677_v56, %v539_v16  ;;  %v686_v2 = vadd.f32 %v678_v15, %v540_v33  ;;  %v675_v27 = vmul.f32 %v667_v24, %v2955_v55  ;;  %v676_v49 = vmul.f32 %v667_v24, %v2956_v22  ;;  %v2595_v26 = vpop.permute.xlu1 %984 }
 0x1e2   :  { %v929_v44 = vmul.f32 %v921_v18, %v2579_v35  ;;  %v930_v51 = vmul.f32 %v922_v7, %v2581_v41  ;;  %v842_v7 = vmul.f32 %v2378_v5, %v817_v43  ;;  %v843_v24 = vmul.f32 %v2378_v5, %v821_v12 }
 0x1e3   :  { %v877_v40 = vadd.f32 %v869_v59, %v685_v1  ;;  %v878_v23 = vadd.f32 %v870_v57, %v686_v2  ;;  %v683_v29 = vadd.f32 %v675_v27, %v626_v63  ;;  %v684_v3 = vadd.f32 %v676_v49, %v627_v0  ;;  %v2959_v0 = vld [vmem:[#allocation20_spill] sm:$0xff]  ;;  %v2960_v57 = vld [vmem:[#allocation19_spill] sm:$0xff] }
 0x1e4   :  { %v937_v9 = vmul.f32 0.044715, %v929_v44  ;;  %v938_v28 = vmul.f32 0.044715, %v930_v51  ;;  %v2601_v6 = vpop.permute.xlu0 %1094  ;;  %v2961_v27 = vld [vmem:[#allocation23_spill] sm:$0xff]  ;;  %v2962_v49 = vld [vmem:[#allocation24_spill] sm:$0xff] }
 0x1e5   :  { %v2604_v34 = vadd.f32 %v2387_v58, %v877_v40  ;;  %v2607_v32 = vadd.f32 %v2387_v58, %v878_v23  ;;  %v691_v45 = vadd.f32 %v683_v29, %v545_v10  ;;  %v692_v30 = vadd.f32 %v684_v3, %v546_v61 }
 0x1e6   :  { %v945_v60 = vadd.f32 %v937_v9, %v2579_v35  ;;  %v946_v42 = vadd.f32 %v938_v28, %v2581_v41  ;;  %v2613_v4 = vpop.permute.xlu1 %1014  ;;  %v2659_v50 = vsub.s32 7, %v2963_v37 }
 0x1e7   :  { %v917_v46 = vmul.f32 %v2604_v34, %v2604_v34  ;;  %v918_v53 = vmul.f32 %v2607_v32, %v2607_v32  ;;  %v883_v10 = vadd.f32 %v875_v13, %v691_v45  ;;  %v884_v61 = vadd.f32 %v876_v14, %v692_v30 }
 0x1e8   :  { %v953_v58 = vmul.f32 0.7978846, %v945_v60  ;;  %v954_v48 = vmul.f32 0.7978846, %v946_v42 }
 0x1e9   :  { %v925_v25 = vmul.f32 %v917_v46, %v2604_v34  ;;  %v926_v11 = vmul.f32 %v918_v53, %v2607_v32  ;;  %v724_v16 = vpop.permute.xlu0 %723  ;;  %v907_v33 = vadd.f32 %v2391_v38, %v883_v10  ;;  %v2631_v63 = vadd.f32 %v2391_v38, %v884_v61 }
 0x1ea   :  { %1635 = vtanh.f32 %v953_v58  ;;  %v736_v56 = vmul.f32 %v724_v16, %v2959_v0  ;;  %v737_v18 = vmul.f32 %v724_v16, %v2960_v57  ;;  %v2674_v16 = vsub.s32 5, %v2963_v37 }
 0x1eb   :  { %v933_v15 = vmul.f32 0.044715, %v925_v25  ;;  %v934_v59 = vmul.f32 0.044715, %v926_v11  ;;  %1637 = vtanh.f32 %v954_v48  ;;  %v2635_v17 = vpop.permute.xlu1 %1030  ;;  %v923_v1 = vmul.f32 %v907_v33, %v907_v33 }
 0x1ec   :  { %v924_v2 = vmul.f32 %v2631_v63, %v2631_v63  ;;  %v793_v22 = vadd.f32 %v2961_v27, %v736_v56  ;;  %v794_v62 = vadd.f32 %v2962_v49, %v737_v18  ;;  %v914_v11 = vmul.f32 0.5, %v2581_v41 }
 0x1ed   :  { %v941_v38 = vadd.f32 %v933_v15, %v2604_v34  ;;  %v942_v55 = vadd.f32 %v934_v59, %v2607_v32  ;;  %v931_v36 = vmul.f32 %v923_v1, %v907_v33  ;;  %v909_v0 = vmul.f32 0.5, %v2604_v34  ;;  %v1282_v1 = vpop.permute.xlu0 %1281 }
 0x1ee   :  { %v932_v44 = vmul.f32 %v924_v2, %v2631_v63  ;;  %v850_v23 = vadd.f32 %v842_v7, %v793_v22  ;;  %v851_v29 = vadd.f32 %v843_v24, %v794_v62  ;;  %v2678_v59 = vsub.s32 6, %v2963_v37 }
 0x1ef   :  { %v949_v51 = vmul.f32 0.7978846, %v941_v38  ;;  %v950_v40 = vmul.f32 0.7978846, %v942_v55  ;;  %v939_v5 = vmul.f32 0.044715, %v931_v36 }
 0x1f0   :  { %v940_v3 = vmul.f32 0.044715, %v932_v44  ;;  %v2646_v9 = vpop.permute.xlu1 %1062  ;;  %v871_v28 = vmul.f32 %v2508_v54, %v850_v23  ;;  %v872_v45 = vmul.f32 %v2511_v8, %v851_v29  ;;  %v913_v54 = vmul.f32 0.5, %v2579_v35 }
 0x1f1   :  { %1639 = vtanh.f32 %v949_v51  ;;  %v947_v30 = vadd.f32 %v939_v5, %v907_v33  ;;  %v2671_v35 = vsub.s32 4, %v2963_v37  ;;  %v910_v41 = vmul.f32 0.5, %v2607_v32 }
 0x1f2   :  { %1641 = vtanh.f32 %v950_v40  ;;  %v879_v13 = vadd.f32 %v871_v28, %v2559_v39  ;;  %v880_v14 = vadd.f32 %v872_v45, %v2561_v31  ;;  %v948_v42 = vadd.f32 %v940_v3, %v2631_v63 }
 0x1f3   :  { %v955_v61 = vmul.f32 0.7978846, %v947_v30  ;;  %v2662_v39 = vsub.s32 2, %v2963_v37  ;;  %v2685_v24 = vmul.f32 0.5, %v907_v33  ;;  %v2688_v34 = vmul.f32 0.5, %v2631_v63 }
 0x1f4   :  { %v1636_v60 = vpop.eup %1635  ;;  %v903_v58 = vadd.f32 %v2545_v47, %v879_v13  ;;  %v904_v48 = vadd.f32 %v2545_v47, %v880_v14  ;;  %v956_v43 = vmul.f32 0.7978846, %v948_v42  ;;  %v2668_v47 = vsub.s32 3, %v2963_v37  ;;  %v1330_v42 = vpop.permute.xlu0 %1329 }
 0x1f5   :  { %v1638_v46 = vpop.eup %1637  ;;  %v969_v53 = vadd.f32 1.0, %v1636_v60  ;;  %v2655_v10 = vpop.permute.xlu1 %1078  ;;  %1643 = vtanh.f32 %v955_v61 }
 0x1f6   :  { %v970_v8 = vadd.f32 1.0, %v1638_v46  ;;  %v919_v12 = vmul.f32 %v903_v58, %v903_v58  ;;  %v920_v25 = vmul.f32 %v904_v48, %v904_v48  ;;  %1645 = vtanh.f32 %v956_v43 }
 0x1f7   :  { %v2664_v31 = vmul.f32 %v969_v53, %v913_v54  ;;  %v2692_v22 = vmul.f32 0.5, %v903_v58  ;;  %v2696_v33 = vmul.f32 0.5, %v904_v48 }
 0x1f8   :  { %v927_v56 = vmul.f32 %v919_v12, %v903_v58  ;;  %v928_v15 = vmul.f32 %v920_v25, %v904_v48  ;;  %v2683_v7 = vmul.f32 %v970_v8, %v914_v11 }
 0x1f9   :  { %v1287_v55 = vrot.slane %v2664_v31, %v2662_v39  ;;  %v1335_v36 = vrot.slane %v2664_v31, %v2674_v16  ;;  %v1257_v63 = vrot.slane %v2664_v31, %v1805_v19  ;;  %v1271_v23 = vrot.slane %v2664_v31, %v1808_v20 }
 0x1fa   :  { %v2680_v57 = vpop.permute.xlu1 %1251  ;;  %v935_v49 = vmul.f32 0.044715, %v927_v56  ;;  %v936_v32 = vmul.f32 0.044715, %v928_v15  ;;  %v1291_v51 = vrot.slane %v2683_v7, %v2662_v39  ;;  %v1339_v40 = vrot.slane %v2683_v7, %v2674_v16 }
 0x1fb   :  { %v1640_v18 = vpop.eup %1639  ;;  %v2716_v45 = vmul.f32 %v1287_v55, %v1282_v1  ;;  %v2724_v54 = vmul.f32 %v1335_v36, %v1330_v42  ;;  %v1261_v8 = vrot.slane %v2683_v7, %v1805_v19  ;;  %v1262_v12 = vmul.f32 %v1257_v63, %v2680_v57 }
 0x1fc   :  { %v1642_v2 = vpop.eup %1641  ;;  %v965_v38 = vadd.f32 1.0, %v1640_v18  ;;  %v943_v14 = vadd.f32 %v935_v49, %v903_v58  ;;  %v944_v60 = vadd.f32 %v936_v32, %v904_v48  ;;  %v1293_v43 = vmul.f32 %v1291_v51, %v1282_v1 }
 0x1fd   :  { %v966_v27 = vadd.f32 1.0, %v1642_v2  ;;  %v2734_v11 = vmul.f32 %v1339_v40, %v1330_v42  ;;  %v1263_v63 = vmul.f32 %v1261_v8, %v2680_v57 }
 0x1fe   :  { %v2694_v62 = vmul.f32 %v965_v38, %v909_v0  ;;  %v951_v18 = vmul.f32 0.7978846, %v943_v14  ;;  %v1303_v14 = vrot.slane %v2664_v31, %v2668_v47 }
 0x1ff   :  { %v2702_v44 = vmul.f32 %v966_v27, %v910_v41  ;;  %v1266_v29 = vpop.permute.xlu1 %1265  ;;  %v1644_v56 = vpop.eup %1643  ;;  %v952_v41 = vmul.f32 0.7978846, %v944_v60 }
 0x200   :  { %v990_v5 = vrot.slane %v2694_v62, %v1805_v19  ;;  %v1004_v3 = vrot.slane %v2694_v62, %v1808_v20  ;;  %v1020_v28 = vrot.slane %v2694_v62, %v2662_v39  ;;  %v1052_v55 = vrot.slane %v2694_v62, %v2671_v35 }
 0x201   :  { %v994_v30 = vrot.slane %v2702_v44, %v1805_v19  ;;  %v1008_v13 = vrot.slane %v2702_v44, %v1808_v20  ;;  %v1024_v58 = vrot.slane %v2702_v44, %v2662_v39  ;;  %v1040_v38 = vrot.slane %v2702_v44, %v2668_v47 }
 0x202   :  { %v1009_v46 = vmul.f32 %v1004_v3, %v2489_v52  ;;  %v995_v53 = vmul.f32 %v990_v5, %v2595_v26  ;;  %v1025_v48 = vmul.f32 %v1020_v28, %v2613_v4  ;;  %1647 = vtanh.f32 %v951_v18 }
 0x203   :  { %v1010_v61 = vmul.f32 %v1008_v13, %v2489_v52  ;;  %v996_v37 = vmul.f32 %v994_v30, %v2595_v26  ;;  %v1036_v52 = vrot.slane %v2694_v62, %v2668_v47  ;;  %v1646_v26 = vpop.eup %1645  ;;  %v1026_v1 = vmul.f32 %v1024_v58, %v2613_v4 }
 0x204   :  { %v1011_v25 = vadd.f32 %v1009_v46, %v995_v53  ;;  %v1298_v0 = vpop.permute.xlu1 %1297  ;;  %v1056_v49 = vrot.slane %v2702_v44, %v2671_v35  ;;  %v1068_v32 = vrot.slane %v2694_v62, %v2674_v16  ;;  %1649 = vtanh.f32 %v952_v41 }
 0x205   :  { %v1012_v15 = vadd.f32 %v1010_v61, %v996_v37  ;;  %v1041_v27 = vmul.f32 %v1036_v52, %v2635_v17  ;;  %v1042_v4 = vmul.f32 %v1040_v38, %v2635_v17  ;;  %v1057_v40 = vmul.f32 %v1052_v55, %v2543_v21 }
 0x206   :  { %v1027_v2 = vadd.f32 %v1025_v48, %v1011_v25  ;;  %v1072_v5 = vrot.slane %v2702_v44, %v2674_v16  ;;  %v1275_v3 = vrot.slane %v2683_v7, %v1808_v20  ;;  %v1058_v13 = vmul.f32 %v1056_v49, %v2543_v21 }
 0x207   :  { %v1028_v36 = vadd.f32 %v1026_v1, %v1012_v15  ;;  %v1307_v17 = vrot.slane %v2683_v7, %v2668_v47  ;;  %v1073_v60 = vmul.f32 %v1068_v32, %v2646_v9  ;;  %v1276_v42 = vmul.f32 %v1271_v23, %v1266_v29 }
 0x208   :  { %v1043_v51 = vadd.f32 %v1041_v27, %v1027_v2  ;;  %v1319_v46 = vrot.slane %v2664_v31, %v2671_v35  ;;  %v1074_v8 = vmul.f32 %v1072_v5, %v2646_v9  ;;  %v1084_v61 = vrot.slane %v2694_v62, %v2678_v59 }
 0x209   :  { %v1314_v28 = vpop.permute.xlu1 %1313  ;;  %v1044_v30 = vadd.f32 %v1042_v4, %v1028_v36  ;;  %v1088_v21 = vrot.slane %v2702_v44, %v2678_v59  ;;  %v1100_v37 = vrot.slane %v2694_v62, %v2659_v50  ;;  %v1277_v25 = vmul.f32 %v1275_v3, %v1266_v29 }
 0x20a   :  { %v1059_v57 = vadd.f32 %v1057_v40, %v1043_v51  ;;  %v1278_v58 = vadd.f32 %v1276_v42, %v1262_v12  ;;  %v1323_v23 = vrot.slane %v2683_v7, %v2671_v35  ;;  %v971_v48 = vadd.f32 1.0, %v1644_v56 }
 0x20b   :  { %v1060_v53 = vadd.f32 %v1058_v13, %v1044_v30  ;;  %v1308_v41 = vmul.f32 %v1303_v14, %v1298_v0  ;;  %v1104_v9 = vrot.slane %v2702_v44, %v2659_v50  ;;  %v1279_v1 = vadd.f32 %v1277_v25, %v1263_v63 }
 0x20c   :  { %v1075_v15 = vadd.f32 %v1073_v60, %v1059_v57  ;;  %v1294_v2 = vadd.f32 %v2716_v45, %v1278_v58  ;;  %v1309_v38 = vmul.f32 %v1307_v17, %v1298_v0  ;;  %v972_v55 = vadd.f32 1.0, %v1646_v26  ;;  %v1648_v27 = vpop.eup %1647  ;;  %v1111_v60 = vpop.permute.xlu0 %1110 }
 0x20d   :  { %v1076_v18 = vadd.f32 %v1074_v8, %v1060_v53  ;;  %v1089_v62 = vmul.f32 %v1084_v61, %v2655_v10  ;;  %v1090_v29 = vmul.f32 %v1088_v21, %v2655_v10  ;;  %v1324_v12 = vmul.f32 %v1319_v46, %v1314_v28 }
 0x20e   :  { %v1346_v52 = vpop.permute.xlu1 %1345  ;;  %v1105_v56 = vmul.f32 %v1100_v37, %v2601_v6  ;;  %v1295_v49 = vadd.f32 %v1293_v43, %v1279_v1  ;;  %v1310_v32 = vadd.f32 %v1308_v41, %v1294_v2  ;;  %v1325_v36 = vmul.f32 %v1323_v23, %v1314_v28  ;;  %v1650_v4 = vpop.eup %1649 }
 0x20f   :  { %v2779_v51 = vmul.f32 %v971_v48, %v2685_v24  ;;  %v967_v44 = vadd.f32 1.0, %v1648_v27  ;;  %v1091_v63 = vadd.f32 %v1089_v62, %v1075_v15  ;;  %v1092_v45 = vadd.f32 %v1090_v29, %v1076_v18 }
 0x210   :  { %v968_v0 = vadd.f32 1.0, %v1650_v4  ;;  %v1311_v26 = vadd.f32 %v1309_v38, %v1295_v49  ;;  %v1326_v40 = vadd.f32 %v1324_v12, %v1310_v32  ;;  %v1351_v10 = vrot.slane %v2664_v31, %v2678_v59  ;;  %v1394_v1 = vpop.permute.xlu0 %1393 }
 0x211   :  { %v2784_v3 = vmul.f32 %v972_v55, %v2688_v34  ;;  %v1106_v43 = vmul.f32 %v1104_v9, %v2601_v6  ;;  %v2788_v28 = vmul.f32 %v967_v44, %v2692_v22  ;;  %v1355_v24 = vrot.slane %v2683_v7, %v2678_v59 }
 0x212   :  { %v2793_v30 = vmul.f32 %v968_v0, %v2696_v33  ;;  %v1327_v13 = vadd.f32 %v1325_v36, %v1311_v26  ;;  %v1342_v14 = vadd.f32 %v2724_v54, %v1326_v40  ;;  %v1356_v17 = vmul.f32 %v1351_v10, %v1346_v52 }
 0x213   :  { %v1362_v5 = vpop.permute.xlu1 %1361  ;;  %v1107_v57 = vadd.f32 %v1105_v56, %v1091_v63  ;;  %v1116_v34 = vrot.slane %v2788_v28, %v1805_v19  ;;  %v1108_v42 = vadd.f32 %v1106_v43, %v1092_v45  ;;  %v1357_v46 = vmul.f32 %v1355_v24, %v1346_v52 }
 0x214   :  { %v1120_v6 = vrot.slane %v2793_v30, %v1805_v19  ;;  %v1343_v22 = vadd.f32 %v2734_v11, %v1327_v13  ;;  %v1399_v61 = vrot.slane %v2779_v51, %v1808_v20  ;;  %v1403_v54 = vrot.slane %v2784_v3, %v1808_v20  ;;  %v1159_v26 = vpop.permute.xlu0 %1158 }
 0x215   :  { %v1121_v53 = vmul.f32 %v1116_v34, %v1111_v60  ;;  %v1358_v21 = vadd.f32 %v1356_v17, %v1342_v14  ;;  %v1367_v25 = vrot.slane %v2664_v31, %v2659_v50  ;;  %v1371_v58 = vrot.slane %v2683_v7, %v2659_v50 }
 0x216   :  { %v1122_v33 = vmul.f32 %v1120_v6, %v1111_v60  ;;  %v1383_v11 = vrot.slane %v2779_v51, %v1805_v19  ;;  %v1359_v48 = vadd.f32 %v1357_v46, %v1343_v22  ;;  %v1387_v15 = vrot.slane %v2784_v3, %v1805_v19 }
 0x217   :  { %v1123_v37 = vadd.f32 %v1121_v53, %v1107_v57  ;;  %v1132_v18 = vrot.slane %v2788_v28, %v1808_v20  ;;  %v1372_v41 = vmul.f32 %v1367_v25, %v1362_v5  ;;  %v1373_v52 = vmul.f32 %v1371_v58, %v1362_v5 }
 0x218   :  { %v1378_v8 = vpop.permute.xlu1 %1377  ;;  %v1124_v23 = vadd.f32 %v1122_v33, %v1108_v42  ;;  %v1136_v31 = vrot.slane %v2793_v30, %v1808_v20  ;;  %v1404_v12 = vmul.f32 %v1399_v61, %v1394_v1  ;;  %v1405_v27 = vmul.f32 %v1403_v54, %v1394_v1 }
 0x219   :  { %v1388_v9 = vmul.f32 %v1383_v11, %v1378_v8  ;;  %v1389_v2 = vmul.f32 %v1387_v15, %v1378_v8  ;;  %v1374_v38 = vadd.f32 %v1372_v41, %v1358_v21  ;;  %v1375_v55 = vadd.f32 %v1373_v52, %v1359_v48 }
 0x21a   :  { %v1164_v19 = vrot.slane %v2788_v28, %v2668_v47  ;;  %v1168_v56 = vrot.slane %v2793_v30, %v2668_v47  ;;  %v1148_v20 = vrot.slane %v2788_v28, %v2662_v39  ;;  %v1152_v44 = vrot.slane %v2793_v30, %v2662_v39 }
 0x21b   :  { %v1390_v49 = vadd.f32 %v1388_v9, %v1374_v38  ;;  %v1391_v32 = vadd.f32 %v1389_v2, %v1375_v55  ;;  %v1415_v14 = vrot.slane %v2779_v51, %v2662_v39  ;;  %v1419_v17 = vrot.slane %v2784_v3, %v2662_v39  ;;  %v1442_v39 = vpop.permute.xlu0 %1441 }
 0x21c   :  { %v1169_v5 = vmul.f32 %v1164_v19, %v1159_v26  ;;  %v1170_v43 = vmul.f32 %v1168_v56, %v1159_v26  ;;  %v1447_v53 = vrot.slane %v2779_v51, %v2671_v35  ;;  %v1451_v8 = vrot.slane %v2784_v3, %v2671_v35 }
 0x21d   :  { %v1127_v7 = vpop.permute.xlu1 %1126  ;;  %v1406_v45 = vadd.f32 %v1404_v12, %v1390_v49  ;;  %v1407_v0 = vadd.f32 %v1405_v27, %v1391_v32  ;;  %v1431_v33 = vrot.slane %v2779_v51, %v2668_v47  ;;  %v1435_v61 = vrot.slane %v2784_v3, %v2668_v47 }
 0x21e   :  { %v1137_v62 = vmul.f32 %v1132_v18, %v1127_v7  ;;  %v1138_v29 = vmul.f32 %v1136_v31, %v1127_v7  ;;  %v1452_v25 = vmul.f32 %v1447_v53, %v1442_v39  ;;  %v1453_v58 = vmul.f32 %v1451_v8, %v1442_v39 }
 0x21f   :  { %v1180_v48 = vrot.slane %v2788_v28, %v2671_v35  ;;  %v1184_v15 = vrot.slane %v2793_v30, %v2671_v35  ;;  %v1212_v47 = vrot.slane %v2788_v28, %v2678_v59  ;;  %v1216_v1 = vrot.slane %v2793_v30, %v2678_v59 }
 0x220   :  { %v1139_v36 = vadd.f32 %v1137_v62, %v1123_v37  ;;  %v1140_v4 = vadd.f32 %v1138_v29, %v1124_v23  ;;  %v1196_v38 = vrot.slane %v2788_v28, %v2674_v16  ;;  %v1200_v55 = vrot.slane %v2793_v30, %v2674_v16  ;;  %v1207_v62 = vpop.permute.xlu0 %1206 }
 0x221   :  { %v1217_v27 = vmul.f32 %v1212_v47, %v1207_v62  ;;  %v1218_v19 = vmul.f32 %v1216_v1, %v1207_v62  ;;  %v1463_v32 = vrot.slane %v2779_v51, %v2674_v16 }
 0x222   :  { %v1143_v63 = vpop.permute.xlu1 %1142 }
 0x223   :  { %v1153_v40 = vmul.f32 %v1148_v20, %v1143_v63  ;;  %v1154_v10 = vmul.f32 %v1152_v44, %v1143_v63 }
 0x225   :  { %v1155_v24 = vadd.f32 %v1153_v40, %v1139_v36  ;;  %v1156_v13 = vadd.f32 %v1154_v10, %v1140_v4  ;;  %v1467_v36 = vrot.slane %v2784_v3, %v2674_v16  ;;  %v1479_v40 = vrot.slane %v2779_v51, %v2678_v59 }
 0x226   :  { %v1410_v57 = vpop.permute.xlu1 %1409  ;;  %v1483_v10 = vrot.slane %v2784_v3, %v2678_v59  ;;  %v1499_v16 = vrot.slane %v2784_v3, %v2659_v50  ;;  %v1232_v59 = vrot.slane %v2793_v30, %v2659_v50 }
 0x227   :  { %v1420_v34 = vmul.f32 %v1415_v14, %v1410_v57  ;;  %v1421_v60 = vmul.f32 %v1419_v17, %v1410_v57  ;;  %v1171_v42 = vadd.f32 %v1169_v5, %v1155_v24  ;;  %v1172_v6 = vadd.f32 %v1170_v43, %v1156_v13  ;;  %v1490_v5 = vpop.permute.xlu0 %1489 }
 0x228   :  { %v1495_v24 = vrot.slane %v2779_v51, %v2659_v50  ;;  %v1501_v57 = vmul.f32 %v1499_v16, %v1490_v5 }
 0x229   :  { %v1422_v22 = vadd.f32 %v1420_v34, %v1406_v45  ;;  %v1423_v46 = vadd.f32 %v1421_v60, %v1407_v0 }
 0x22a   :  { %v1500_v17 = vmul.f32 %v1495_v24, %v1490_v5 }
 0x22b   :  { %v1426_v54 = vpop.permute.xlu1 %1425 }
 0x22c   :  { %v1436_v21 = vmul.f32 %v1431_v33, %v1426_v54  ;;  %v1437_v37 = vmul.f32 %v1435_v61, %v1426_v54 }
 0x22e   :  { %v1438_v11 = vadd.f32 %v1436_v21, %v1422_v22  ;;  %v1439_v23 = vadd.f32 %v1437_v37, %v1423_v46 }
 0x230   :  { %v1175_v18 = vpop.permute.xlu1 %1174  ;;  %v1454_v41 = vadd.f32 %v1452_v25, %v1438_v11  ;;  %v1455_v52 = vadd.f32 %v1453_v58, %v1439_v23 }
 0x231   :  { %v1185_v9 = vmul.f32 %v1180_v48, %v1175_v18  ;;  %v1186_v31 = vmul.f32 %v1184_v15, %v1175_v18 }
 0x233   :  { %v1187_v2 = vadd.f32 %v1185_v9, %v1171_v42  ;;  %v1188_v7 = vadd.f32 %v1186_v31, %v1172_v6  ;;  %v1228_v42 = vrot.slane %v2788_v28, %v2659_v50 }
 0x235   :  { %v1191_v35 = vpop.permute.xlu1 %1190 }
 0x236   :  { %v1201_v29 = vmul.f32 %v1196_v38, %v1191_v35  ;;  %v1202_v12 = vmul.f32 %v1200_v55, %v1191_v35 }
 0x238   :  { %v1203_v56 = vadd.f32 %v1201_v29, %v1187_v2  ;;  %v1204_v49 = vadd.f32 %v1202_v12, %v1188_v7 }
 0x239   :  { %v1458_v4 = vpop.permute.xlu1 %1457 }
 0x23a   :  { %v1468_v20 = vmul.f32 %v1463_v32, %v1458_v4  ;;  %v1469_v44 = vmul.f32 %v1467_v36, %v1458_v4  ;;  %v1219_v63 = vadd.f32 %v1217_v27, %v1203_v56  ;;  %v1220_v45 = vadd.f32 %v1218_v19, %v1204_v49 }
 0x23c   :  { %v1470_v0 = vadd.f32 %v1468_v20, %v1454_v41  ;;  %v1471_v26 = vadd.f32 %v1469_v44, %v1455_v52 }
 0x23e   :  { %v1474_v43 = vpop.permute.xlu1 %1473 }
 0x23f   :  { %v1484_v13 = vmul.f32 %v1479_v40, %v1474_v43  ;;  %v1485_v14 = vmul.f32 %v1483_v10, %v1474_v43 }
 0x241   :  { %v1486_v34 = vadd.f32 %v1484_v13, %v1470_v0  ;;  %v1487_v60 = vadd.f32 %v1485_v14, %v1471_v26 }
 0x243   :  { %v1223_v6 = vpop.permute.xlu1 %1222  ;;  %v1502_v22 = vadd.f32 %v1500_v17, %v1486_v34  ;;  %v1503_v46 = vadd.f32 %v1501_v57, %v1487_v60 }
 0x244   :  { %v1233_v53 = vmul.f32 %v1228_v42, %v1223_v6  ;;  %v1234_v51 = vmul.f32 %v1232_v59, %v1223_v6 }
 0x246   :  { %v1235_v8 = vadd.f32 %v1233_v53, %v1219_v63  ;;  %v1236_v33 = vadd.f32 %v1234_v51, %v1220_v45 }
 0x248   :  { %v1239_v3 = vpop.permute.xlu1 %1238 }
 0x249   :  { %v1241_v61 = vadd.f32 %v1239_v3, %v1235_v8  ;;  %v1242_v39 = vadd.f32 %v1239_v3, %v1236_v33  ;;  %v1504_v54 = vadd.f32 %v1502_v22, %v1239_v3  ;;  %v1505_v21 = vadd.f32 %v1503_v46, %v1239_v3 }
 0x24b   :  { %v1245_v37 = vcombine.low %v1241_v61, %v1242_v39  ;;  %v1508_v25 = vcombine.low %v1504_v54, %v1505_v21 }
 0x24d   :  { %1247 = vst [vmem:[#allocation2] sm:$0xff] %v1245_v37  ;;  %1511 = vst [vmem:[#allocation2 + $0x8] sm:$0xff] %v1508_v25 }
 0x24e   :  { %1662 = shalt.err (!%p1659_p4)
}
 0x24f   :  { %s1663_s14 = scalar_lea.hbm %s2882_s5, 256 }
 0x250   :  { %p1664_p5 = scmp.ne.s32.totalorder %s2882_s5, %s1663_s14  ;;  %p1667_p6 = scmp.lt.u32.totalorder %s1663_s14, %s2882_s5 }
 0x252   :  { %p1669_p7 = pnand %p1667_p6, %p1664_p5 }
 0x254   :  { %1672 = shalt.err (!%p1669_p7)
}
 0x255   :  { %s1701_s0 = smov 128   ;;  %s1702_s19 = smov 8  }
 0x256   :  { %1523 = dma.vmem_to_hbm [thread:$0]  %s1518_s10, 256, %s2882_s5, [#allocation3], %s1701_s0, %s1701_s0, %s1702_s19  }
 0x257   :  { %1673 = dma.done.wait [#allocation3], 256  }
 0x258   :  { %1674 = vsyncadd [#allocation3], 4294967040 }
 0x259   :  { %1527 = vsyncpa [#allocation3], 1 }

</bundles_post_ra>
